<compile_context>
chip_gen: v5e
topology: v5e:2x2
jax: 0.10.0
libtpu: 0.0.40
codegen_flags: <defaults>
</compile_context>

<pallas_src>
from functools import lru_cache

import numpy as np
import jax
import jax.numpy as jnp
from jax.experimental import pallas as pl
from jax.experimental.pallas import tpu as pltpu

N_FFT = 512
HOP = 160


def _round_up(x, m):
    return int(-(-x // m) * m)


def _stft_kernel(basis_ref, frames_ref, out_ref):
    # basis_T: (n_fft, n_fft) bf16 (hann window folded in), VMEM-resident.
    # frames_T tile: (n_fft, tn) bf16 (frame index on lanes).
    # Pure MXU feed, f32 accumulation; output tile (n_fft, tn) is lane-dense.
    out_ref[...] = jnp.dot(basis_ref[...], frames_ref[...],
                           preferred_element_type=jnp.float32)


@lru_cache(maxsize=None)
def _fused_basis_t(n_fft=N_FFT):
    """Transposed (n_fft, n_fft) DFT basis with the periodic Hann window folded in.

    Row layout (after transpose):
      rows 0 .. n_fft//2          : win[n] *  cos(2*pi*n*k/n_fft), k = 0..n_fft//2
      rows n_fft//2+1 .. n_fft-1  : win[n] * -sin(2*pi*n*k/n_fft), k = 1..n_fft//2-1
    Imag parts of k=0 and k=n_fft//2 are exactly zero -> produced in the epilogue,
    so the matmul height is exactly n_fft with no wasted MXU rows.
    """
    n = np.arange(n_fft)
    win = 0.5 - 0.5 * np.cos(2.0 * np.pi * n / n_fft)           # periodic hann (f64)
    n_half = n_fft // 2
    k_cos = np.arange(n_half + 1)                                # 0..256
    k_sin = np.arange(1, n_half)                                 # 1..255
    # exact integer phase mod n_fft keeps the trig accurate before the bf16 cast
    ang_c = 2.0 * np.pi * ((n[:, None] * k_cos[None, :]) % n_fft) / n_fft
    ang_s = 2.0 * np.pi * ((n[:, None] * k_sin[None, :]) % n_fft) / n_fft
    cos_m = win[:, None] * np.cos(ang_c)
    sin_m = win[:, None] * (-np.sin(ang_s))
    basis = np.concatenate([cos_m, sin_m], axis=1)               # (n_fft, n_fft)
    return jnp.asarray(np.ascontiguousarray(basis.T), dtype=jnp.bfloat16)


def stft_layer(x, n_fft=N_FFT, hop=HOP, frame_tile=None):
    B, T = x.shape
    pad = n_fft // 2
    n_freq = n_fft // 2 + 1                                      # 257

    # center=True, pad_mode='reflect' (torch.stft defaults)
    x_pad = jnp.pad(x.astype(jnp.float32), ((0, 0), (pad, pad)), mode="reflect")
    n_frames = 1 + (T + 2 * pad - n_fft) // hop

    # Transposed framing: frames_t[b, n, f] = x_pad[b, f*hop + n]; frame index f
    # lives on the lane axis from here to the final output (no lane transpose).
    idx_t = jnp.arange(n_fft)[:, None] + hop * jnp.arange(n_frames)[None, :]
    frames_t = x_pad.astype(jnp.bfloat16)[:, idx_t]              # (B, n_fft, n_frames)

    # Frame-axis tile: multiple of 128 (lane-dense output), capped so tiny
    # inputs don't over-pad. 512 amortizes the ~0.35us per-step pipeline cost.
    if frame_tile is None:
        tn = min(512, _round_up(n_frames, 128))
    else:
        assert frame_tile % 128 == 0, "frame_tile must be a multiple of 128"
        tn = frame_tile
    nf_pad = _round_up(n_frames, tn)
    frames_t = jnp.pad(frames_t, ((0, 0), (0, 0), (0, nf_pad - n_frames)))

    basis_t = _fused_basis_t(n_fft)                              # cached constant

    out = pl.pallas_call(
        _stft_kernel,
        out_shape=jax.ShapeDtypeStruct((B, n_fft, nf_pad), jnp.float32),
        grid_spec=pltpu.PrefetchScalarGridSpec(
            num_scalar_prefetch=0,
            grid=(B, nf_pad // tn),
            in_specs=[
                pl.BlockSpec((n_fft, n_fft), lambda b, j: (0, 0)),        # basis_T, resident
                pl.BlockSpec((None, n_fft, tn), lambda b, j: (b, 0, j)),  # frames_T tile
            ],
            out_specs=pl.BlockSpec((None, n_fft, tn), lambda b, j: (b, 0, j)),
        ),
        compiler_params=pltpu.CompilerParams(
            dimension_semantics=("parallel", "parallel")),
    )(basis_t, frames_t)

    # Epilogue: split re/im and insert the two exactly-zero imag bins (k=0, k=n_fft/2).
    # No transpose: freq is already the sublane axis, frame is the lane axis.
    out = out[:, :, :n_frames]                                   # (B, n_fft, nf)
    re = out[:, :n_freq, :]                                      # (B, 257, nf)
    im = jnp.pad(out[:, n_freq:, :], ((0, 0), (1, 1), (0, 0)))   # (B, 257, nf)
    return jnp.stack([re, im], axis=1)                           # (B, 2, 257, nf)


def _reference(x, n_fft=N_FFT, hop=HOP):
    # Pure-JAX f32 reference: windowed frames + rfft (matches torch.stft semantics).
    B, T = x.shape
    pad = n_fft // 2
    x_pad = jnp.pad(x.astype(jnp.float32), ((0, 0), (pad, pad)), mode="reflect")
    n_frames = 1 + (T + 2 * pad - n_fft) // hop
    idx = jnp.arange(n_frames)[:, None] * hop + jnp.arange(n_fft)[None, :]
    n = np.arange(n_fft)
    win = (0.5 - 0.5 * np.cos(2.0 * np.pi * n / n_fft)).astype(np.float32)
    frames = x_pad[:, idx] * jnp.asarray(win)[None, None, :]     # (B, F, n_fft)
    spec = jnp.fft.rfft(frames, axis=-1)                         # (B, F, n_freq)
    spec = jnp.transpose(spec, (0, 2, 1))                        # (B, n_freq, F)
    return jnp.stack([jnp.real(spec), jnp.imag(spec)], axis=1).astype(jnp.float32)


def _check(out, ref):
    o = np.asarray(out, dtype=np.float64)
    r = np.asarray(ref, dtype=np.float64)
    # bf16 operands + f32 accumulation: per-bin noise ~0.02 for N(0,1) input
    # (bin magnitudes ~10-15) -> tight relative-energy bound + scaled atol.
    rel_fro = np.linalg.norm(o - r) / np.linalg.norm(r)
    assert rel_fro < 1e-2, f"relative Frobenius error too large: {rel_fro}"
    np.testing.assert_allclose(o, r, atol=2.5e-1, rtol=1e-2)


if __name__ == "__main__":
    k1, k2 = jax.random.split(jax.random.PRNGKey(0))

    # Case 1: tiny signal (n_frames = 11) -> grid (2, 1): batch-parallel split,
    # heavy frame-axis padding path.
    B, T = 2, 1600
    x = jax.random.normal(k1, (B, T), dtype=jnp.float32)
    out = jax.block_until_ready(stft_layer(x))
    ref = jax.block_until_ready(_reference(x))
    assert out.shape == (B, 2, N_FFT // 2 + 1, 1 + T // HOP), out.shape
    _check(out, ref)

    # Case 2: multi-step frame grid (n_frames = 201, frame_tile=128 -> grid (2, 2)):
    # exercises pipelining across frame tiles and partial-tile padding.
    B2, T2 = 2, 32000
    x2 = jax.random.normal(k2, (B2, T2), dtype=jnp.float32)
    out2 = jax.block_until_ready(stft_layer(x2, frame_tile=128))
    ref2 = jax.block_until_ready(_reference(x2))
    assert out2.shape == (B2, 2, N_FFT // 2 + 1, 1 + T2 // HOP), out2.shape
    _check(out2, ref2)

    print("KERNEL_OK")
</pallas_src>

<mosaic_0001>
module attributes {stable_mosaic.version = 11 : i64} {
  func.func @_stft_kernel(%arg0: i32, %arg1: i32, %arg2: memref<512x512xbf16, #tpu.memory_space<vmem>>, %arg3: memref<1x512x128xbf16, #tpu.memory_space<vmem>>, %arg4: memref<1x512x128xf32, #tpu.memory_space<vmem>>) attributes {dimension_semantics = [#tpu.dimension_semantics<parallel>, #tpu.dimension_semantics<parallel>], iteration_bounds = array<i64: 2, 1>, scalar_prefetch = 0 : i64, scratch_operands = 0 : i64, tpu.core_type = #tpu.core_type<tc>, window_params = [{pipeline_mode = #tpu.pipeline_mode<synchronous>, transform_indices = @transform_0, window_bounds = array<i64: 512, 512>}, {transform_indices = @transform_1, window_bounds = array<i64: 1, 512, 128>}, {transform_indices = @transform_2, window_bounds = array<i64: 1, 512, 128>}]} {
    %c0 = arith.constant 0 : index
    %c0_0 = arith.constant 0 : index
    %0 = vector.load %arg2[%c0, %c0_0] : memref<512x512xbf16, #tpu.memory_space<vmem>>, vector<512x512xbf16>
    %c0_1 = arith.constant 0 : index
    %c0_2 = arith.constant 0 : index
    %c0_3 = arith.constant 0 : index
    %1 = vector.load %arg3[%c0_1, %c0_2, %c0_3] : memref<1x512x128xbf16, #tpu.memory_space<vmem>>, vector<1x512x128xbf16>
    %2 = vector.shape_cast %1 : vector<1x512x128xbf16> to vector<512x128xbf16>
    %cst = arith.constant dense<0.000000e+00> : vector<512x128xf32>
    %3 = tpu.matmul %0, %2, %cst {dimension_numbers = #tpu.dot_dimension_numbers<[1], [0], [0], [1], [0, 0, 1, 1], [], []>} : vector<512x512xbf16>, vector<512x128xbf16>, vector<512x128xf32> -> vector<512x128xf32>
    %c0_4 = arith.constant 0 : index
    %c0_5 = arith.constant 0 : index
    %c0_6 = arith.constant 0 : index
    %4 = vector.load %arg4[%c0_4, %c0_5, %c0_6] : memref<1x512x128xf32, #tpu.memory_space<vmem>>, vector<1x512x128xf32>
    %5 = vector.shape_cast %4 : vector<1x512x128xf32> to vector<512x128xf32>
    %6 = vector.shape_cast %3 : vector<512x128xf32> to vector<1x512x128xf32>
    tpu.vector_store %arg4[%c0_4, %c0_5, %c0_6], %6 {strides = array<i32>} : memref<1x512x128xf32, #tpu.memory_space<vmem>>, vector<1x512x128xf32>,
    return
  }
  func.func @transform_0(%arg0: i32, %arg1: i32) -> (i32, i32) {
    %c0_i32 = arith.constant 0 : i32
    %c0_i32_0 = arith.constant 0 : i32
    %c0_i32_1 = arith.constant 0 : i32
    return %c0_i32, %c0_i32_0 : i32, i32
  }
  func.func @transform_1(%arg0: i32, %arg1: i32) -> (i32, i32, i32) {
    %c0_i32 = arith.constant 0 : i32
    %c0_i32_0 = arith.constant 0 : i32
    return %arg0, %c0_i32, %arg1 : i32, i32, i32
  }
  func.func @transform_2(%arg0: i32, %arg1: i32) -> (i32, i32, i32) {
    %c0_i32 = arith.constant 0 : i32
    %c0_i32_0 = arith.constant 0 : i32
    return %arg0, %c0_i32, %arg1 : i32, i32, i32
  }
}

</mosaic_0001>

<bundles_post_ra>
// kernel: tpu_custom_call.1
= control target key start
LH: loop header
LB: loop body
LE: loop exit
PB: predicated region body
PF: predicated region fallthrough
CT: control target
= control target key end

     0   :  { %7 = vsyncpa [#allocation3], 0  ;;  %s3395_s0 = inlined_call_operand.hbm [shape: bf16[512,512], index: 0, kind: input, shape index: {}]   ;;  %s3396_s1 = inlined_call_operand.hbm [shape: bf16[2,512,128], index: 1, kind: input, shape index: {}]   ;;  %s3397_s2 = inlined_call_operand.hbm [shape: f32[2,512,128], index: 2, kind: output, shape index: {}]  }
   0x1   :  { %8 = vsyncpa [#allocation6], 0 }
   0x2   :  { %10 = vsyncpa [#allocation6 + $0x1], 0 }
   0x3   :  { %11 = vsyncpa [#allocation4], 0 }
   0x4   :  { %13 = vsyncpa [#allocation4 + $0x1], 0  ;;  %s3144_s9 = smov 0   ;;  %s3146_s10 = smov 0  }
   0x5   :  { %s3148_s11 = smov 0   ;;  %s3150_s12 = smov 0  }
   0x6   :  { %s3152_s13 = smov 0   ;;  %s3154_s14 = smov 0  }
   0x7 LB: > { %s2076_s15 = sadd.s32 4294967295, %s3120_s14   ;;  %s2077_s16 = sadd.s32 4294967294, %s3120_s14   ;;  %s3120_s14 = sphi %s3154_s14, %s19_s14   ;;  %s3116_s13 = sphi %s3152_s13, %s3409_s13   ;;  %s3112_s12 = sphi %s3150_s12, %s3408_s12   ;;  %s3108_s11 = sphi %s3148_s11, %s3407_s11   ;;  %s3104_s10 = sphi %s3146_s10, %s3406_s10   ;;  %s3100_s9 = sphi %s3144_s9, %s3405_s9  }
   0x8   : > { %p74_p0 = scmp.ne.s32.totalorder %s3104_s10, %s3100_s9  ;;  %p3178_p1 = scmp.eq.s32.totalorder %s2076_s15, 0 }
   0x9   : > { %p3182_p2 = scmp.eq.s32.totalorder %s2076_s15, 1  ;;  %p106_p3 = scmp.eq.s32.totalorder %s2077_s16, 1 }
   0xa   : > { %p3188_p4 = por %p3178_p1, %p74_p0  ;;  %p2078_p5 = scmp.ge.s32.totalorder %s3120_s14, 1 }
   0xb   : > { %p3193_p6 = por %p106_p3, %p74_p0  ;;  %p113_p7 = scmp.lt.s32.totalorder %s3120_s14, 3 }
   0xc   : > { %s124_s23 = sshll.u32 %s3395_s0, 4  ;;  %s3122_s25 = smov [#allocation2]   ;;  %s125_s23 = int_to_ptr.hbm [resolvable:$true] %s124_s23 }
   0xd   : > { %p3201_p8 = pnand %p2078_p5, %p113_p7  ;;  %s126_s26 = sshll.u32 %s3122_s25, 4  ;;  %s127_s26 = int_to_ptr.vmem [resolvable:$true] %s126_s26 }
   0xe   : > { %p2080_p11 = scmp.ge.s32.totalorder %s3120_s14, 2  ;;  %s3123_s27 = smov 256  }
   0xf   : > { %p2903_p9 = pneg %p3201_p8  ;;  %s3124_s28 = smov 16  }
  0x10   : > { %s31_s29 = sadd.s32 1, %s3116_s13  ;;  %s61_s30 = sadd.s32 1, %s3108_s11 }
  0x11   : > { %p2904_p10 = pnand %p2903_p9, %p3178_p1  ;;  %p33_p12 = scmp.ge.s32.totalorder %s31_s29, 2 }
  0x12   : > { %p68_p13 = scmp.ne.s32.totalorder %s3108_s11, %s3104_s10  ;;  %p69_p0 = scmp.eq.s32.totalorder %s3120_s14, 0 }
  0x13   : > { %2906 = dma.hbm_to_vmem [thread:$0]  (!%p2904_p10), %s125_s23, 16384, %s127_s26, [#allocation3], %s3123_s27, %s3123_s27, %s3124_s28  }
  0x14   : > { %s3411_s29 = smov (%p33_p12, %s31_s29), 0  ;;  %p3217_p3 = por %p69_p0, %p68_p13 }
  0x15   : > { %p3223_p5 = por %p3182_p2, %p68_p13  ;;  %s56_s5 = ssub.s32 %s3116_s13, %s3411_s29 }
  0x16   : > { %p2916_p7 = scmp.lt.s32.totalorder %s3120_s14, 2  ;;  %p59_p9 = scmp.eq.s32.totalorder %s56_s5, 0 }
  0x17   : > { %s140_s6 = sand.u32 1, %s3108_s11   ;;  %s2733_s15 = sshll.u32 %s3116_s13, 8 }
  0x18   : > { %s2081_s7 = sshll.u32 %s140_s6, 8  ;;  %s150_s22 = scalar_lea.hbm %s3396_s1, %s2733_s15 }
  0x19   : > { %s3232_s8 = scalar_select %p59_p9, %s3108_s11, %s61_s30  }
  0x1a   : > { %s144_s23 = scalar_lea.vmem [#allocation5], %s2081_s7  ;;  %s151_s18 = sshll.u32 %s150_s22, 4  ;;  %s152_s18 = int_to_ptr.hbm [resolvable:$true] %s151_s18 }
  0x1b   : > { %s153_s25 = sshll.u32 %s144_s23, 4  ;;  %p2908_p2 = pnand %p2916_p7, %p3217_p3  ;;  %s154_s25 = int_to_ptr.vmem [resolvable:$true] %s153_s25 }
  0x1c   : > { %s141_s26 = scalar_lea.sflag [#allocation6], %s140_s6  ;;  %s3125_s27 = smov 64  }
  0x1d   : > { %s3126_s28 = smov 4   ;;  %165 = sbr.rel (%p3201_p8) target bundleno = 717 (0x2cd), region = 28 }
  0x1e   : > { %2910 = dma.hbm_to_vmem [thread:$0]  (!%p2908_p2), %s152_s18, 4096, %s154_s25, %s141_s26, %s3125_s27, %s3125_s27, %s3126_s28  }
  0x22   : > { %3087 = dma.done.wait (%p3178_p1), [#allocation3], 16384  }
  0x23   : > { %3089 = vsyncadd (%p3178_p1), [#allocation3], 4294950912  ;;  %s3247_s30 = sand.u32 1, %s3104_s10  }
  0x24   : > { %s2086_s3 = sshll.u32 %s3247_s30, 8  ;;  %s173_s5 = scalar_lea.sflag [#allocation6], %s3247_s30 }
  0x25   : > { %s3251_s6 = scalar_lea.vmem [#allocation5], %s2086_s3 }
  0x26   : > { %3091 = dma.done.wait (%p3188_p4), %s173_s5, 4096  }
  0x27   : > { %3093 = vsyncadd (%p3188_p4), %s173_s5, 4294963200  ;;  %v2869_v0 = vld [vmem:[%s3251_s6 + $0x38] sm:$0xff]  ;;  %v2868_v4 = vld [vmem:[%s3251_s6 + $0x30] sm:$0xff]  ;;  %s2087_s17 = sshll.u32 %s3247_s30, 9  ;;  %s2894_s24 = sshll.u32 %s3112_s12, 9 }
  0x28   : > { %v2877_v1 = vld [vmem:[%s3251_s6 + $0x78] sm:$0xff]  ;;  %1222 = vmatpush.bf16.msra.mxu0 %v2869_v0  ;;  %v2876_v5 = vld [vmem:[%s3251_s6 + $0x70] sm:$0xff]  ;;  %v2867_v8 = vld [vmem:[%s3251_s6 + $0x28] sm:$0xff]  ;;  %s3290_s19 = scalar_lea.vmem [#allocation7], %s2087_s17  ;;  %s1975_s16 = scalar_lea.hbm %s3397_s2, %s2894_s24 }
  0x29   : > { %v2885_v2 = vld [vmem:[%s3251_s6 + $0xb8] sm:$0xff]  ;;  %1391 = vmatpush.bf16.msra.mxu1 %v2877_v1  ;;  %v2884_v6 = vld [vmem:[%s3251_s6 + $0xb0] sm:$0xff]  ;;  %v2875_v9 = vld [vmem:[%s3251_s6 + $0x68] sm:$0xff]  ;;  %s1976_s21 = sshll.u32 %s3290_s19, 4  ;;  %s1978_s22 = sshll.u32 %s1975_s16, 4  ;;  %s1977_s21 = int_to_ptr.vmem [resolvable:$true] %s1976_s21  ;;  %s1979_s22 = int_to_ptr.hbm [resolvable:$true] %s1978_s22 }
  0x2a   : > { %v2893_v3 = vld [vmem:[%s3251_s6 + $0xf8] sm:$0xff]  ;;  %1560 = vmatpush.bf16.msra.mxu2 %v2885_v2  ;;  %v2892_v7 = vld [vmem:[%s3251_s6 + $0xf0] sm:$0xff]  ;;  %v2883_v10 = vld [vmem:[%s3251_s6 + $0xa8] sm:$0xff]  ;;  %s1963_s12 = scalar_lea.sflag [#allocation4], %s3247_s30  ;;  %s3048_s23 = sshra.s32 %s1979_s22, 4  ;;  %s3049_s23 = int_to_ptr.hbm [resolvable:$true] %s3048_s23 }
  0x2b   : > { %1729 = vmatpush.bf16.msra.mxu3 %v2893_v3  ;;  %v2891_v11 = vld [vmem:[%s3251_s6 + $0xe8] sm:$0xff]  ;;  %v2866_v12 = vld [vmem:[%s3251_s6 + $0x20] sm:$0xff]  ;;  %v2865_v16 = vld [vmem:[%s3251_s6 + $0x18] sm:$0xff]  ;;  %s3050_s25 = scalar_lea.hbm %s3049_s23, 512  ;;  %s3054_s27 = scalar_lea.hbm %s3397_s2, 1024 }
  0x2c   : > { %1223 = vmatpush.bf16.msra.mxu0 %v2868_v4  ;;  %v2874_v13 = vld [vmem:[%s3251_s6 + $0x60] sm:$0xff]  ;;  %v2873_v17 = vld [vmem:[%s3251_s6 + $0x58] sm:$0xff]  ;;  %v2864_v20 = vld [vmem:[%s3251_s6 + $0x10] sm:$0xff]  ;;  %p3051_p1 = scmp.ne.s32.totalorder %s3049_s23, %s3050_s25  ;;  %p3055_p10 = scmp.lt.s32.totalorder %s3049_s23, %s3397_s2 }
  0x2d   : > { %1392 = vmatpush.bf16.msra.mxu1 %v2876_v5  ;;  %v2882_v14 = vld [vmem:[%s3251_s6 + $0xa0] sm:$0xff]  ;;  %v2881_v18 = vld [vmem:[%s3251_s6 + $0x98] sm:$0xff]  ;;  %v2872_v21 = vld [vmem:[%s3251_s6 + $0x50] sm:$0xff]  ;;  %p3056_p12 = scmp.lt.s32.totalorder %s3054_s27, %s3050_s25 }
  0x2e   : > { %1561 = vmatpush.bf16.msra.mxu2 %v2884_v6  ;;  %v2890_v15 = vld [vmem:[%s3251_s6 + $0xe0] sm:$0xff]  ;;  %v2889_v19 = vld [vmem:[%s3251_s6 + $0xd8] sm:$0xff]  ;;  %v2880_v22 = vld [vmem:[%s3251_s6 + $0x90] sm:$0xff]  ;;  %p3052_p4 = pnand %p3051_p1, %p3223_p5 }
  0x2f   : > { %1730 = vmatpush.bf16.msra.mxu3 %v2892_v7  ;;  %v2888_v23 = vld [vmem:[%s3251_s6 + $0xd0] sm:$0xff]  ;;  %v2863_v24 = vld [vmem:[%s3251_s6 + $0x8] sm:$0xff]  ;;  %v2862_v28 = vld [vmem:[%s3251_s6] sm:$0xff]  ;;  %p3057_p13 = por %p3056_p12, %p3055_p10 }
  0x30   : > { %1224 = vmatpush.bf16.msra.mxu0 %v2867_v8  ;;  %v2871_v25 = vld [vmem:[%s3251_s6 + $0x48] sm:$0xff]  ;;  %v2870_v29 = vld [vmem:[%s3251_s6 + $0x40] sm:$0xff]  ;;  %v2736_v33 = vld [vmem:[#allocation2 + $0xc] sm:$0xf0]  ;;  %p3053_p8 = pneg %p3052_p4 }
  0x31   : > { %1393 = vmatpush.bf16.msra.mxu1 %v2875_v9  ;;  %v2879_v26 = vld [vmem:[%s3251_s6 + $0x88] sm:$0xff]  ;;  %v2878_v30 = vld [vmem:[%s3251_s6 + $0x80] sm:$0xff]  ;;  %v2092_v35 = vld [vmem:[#allocation2 + $0x10] sm:$0xf0] }
  0x32   : > { %1562 = vmatpush.bf16.msra.mxu2 %v2883_v10  ;;  %v2887_v27 = vld [vmem:[%s3251_s6 + $0xc8] sm:$0xff]  ;;  %v2886_v31 = vld [vmem:[%s3251_s6 + $0xc0] sm:$0xff]  ;;  %v2737_v37 = vld [vmem:[#allocation2 + $0x14] sm:$0xf0]  ;;  %p3058_p0 = pnand %p3057_p13, %p3053_p8 }
  0x33   : > { %1731 = vmatpush.bf16.msra.mxu3 %v2891_v11  ;;  %v2090_v32 = vld [vmem:[#allocation2] sm:$0xf]  ;;  %v2734_v34 = vld [vmem:[#allocation2 + $0x4] sm:$0xf]  ;;  %v2098_v36 = vld [vmem:[#allocation2 + $0x8] sm:$0xf] }
  0x34   : > { %1225 = vmatpush.bf16.msra.mxu0 %v2866_v12  ;;  %v2735_v38 = vld [vmem:[#allocation2 + $0xc] sm:$0xf]  ;;  %v2100_v39 = vld [vmem:[#allocation2 + $0x18] sm:$0xf0]  ;;  %v2091_v40 = vor.u32 %v2736_v33, %v2090_v32  ;;  %v2095_v41 = vor.u32 %v2734_v34, %v2092_v35  ;;  %v2099_v42 = vor.u32 %v2737_v37, %v2098_v36  ;;  %v2106_v44 = vld [vmem:[#allocation2 + $0x20] sm:$0xf] }
  0x35   : > { %1394 = vmatpush.bf16.msra.mxu1 %v2874_v13  ;;  %v2103_v43 = vor.u32 %v2735_v38, %v2100_v39  ;;  %v2740_v45 = vld [vmem:[#allocation2 + $0x2c] sm:$0xf0]  ;;  %v2738_v46 = vld [vmem:[#allocation2 + $0x24] sm:$0xf]  ;;  %v2108_v47 = vld [vmem:[#allocation2 + $0x30] sm:$0xf0] }
  0x36   : > { %1563 = vmatpush.bf16.msra.mxu2 %v2882_v14  ;;  %v2114_v48 = vld [vmem:[#allocation2 + $0x28] sm:$0xf]  ;;  %v2741_v49 = vld [vmem:[#allocation2 + $0x34] sm:$0xf0]  ;;  %v2739_v50 = vld [vmem:[#allocation2 + $0x2c] sm:$0xf]  ;;  %v2107_v52 = vor.u32 %v2740_v45, %v2106_v44  ;;  %v2111_v53 = vor.u32 %v2738_v46, %v2108_v47 }
  0x37   : > { %1732 = vmatpush.bf16.msra.mxu3 %v2890_v15  ;;  %v2116_v51 = vld [vmem:[#allocation2 + $0x38] sm:$0xf0]  ;;  %v2115_v54 = vor.u32 %v2741_v49, %v2114_v48  ;;  %v2122_v56 = vld [vmem:[#allocation2 + $0x40] sm:$0xf]  ;;  %v2744_v57 = vld [vmem:[#allocation2 + $0x4c] sm:$0xf0] }
  0x38   : > { %1226 = vmatpush.bf16.msra.mxu0 %v2865_v16  ;;  %v2119_v55 = vor.u32 %v2739_v50, %v2116_v51  ;;  %v2742_v58 = vld [vmem:[#allocation2 + $0x44] sm:$0xf]  ;;  %v2124_v59 = vld [vmem:[#allocation2 + $0x50] sm:$0xf0]  ;;  %v2130_v60 = vld [vmem:[#allocation2 + $0x48] sm:$0xf]  ;;  %v2123_v0 = vor.u32 %v2744_v57, %v2122_v56 }
  0x39   : > { %1395 = vmatpush.bf16.msra.mxu1 %v2873_v17  ;;  %v2745_v61 = vld [vmem:[#allocation2 + $0x54] sm:$0xf0]  ;;  %v2743_v62 = vld [vmem:[#allocation2 + $0x4c] sm:$0xf]  ;;  %v2132_v63 = vld [vmem:[#allocation2 + $0x58] sm:$0xf0]  ;;  %v2127_v1 = vor.u32 %v2742_v58, %v2124_v59 }
  0x3a   : > { %1564 = vmatpush.bf16.msra.mxu2 %v2881_v18  ;;  %v2131_v2 = vor.u32 %v2745_v61, %v2130_v60  ;;  %v2135_v3 = vor.u32 %v2743_v62, %v2132_v63  ;;  %v2138_v4 = vld [vmem:[#allocation2 + $0x60] sm:$0xf]  ;;  %v2748_v5 = vld [vmem:[#allocation2 + $0x6c] sm:$0xf0]  ;;  %v2746_v6 = vld [vmem:[#allocation2 + $0x64] sm:$0xf] }
  0x3b   : > { %1733 = vmatpush.bf16.msra.mxu3 %v2889_v19  ;;  %v2140_v7 = vld [vmem:[#allocation2 + $0x70] sm:$0xf0]  ;;  %v2146_v8 = vld [vmem:[#allocation2 + $0x68] sm:$0xf]  ;;  %v2749_v9 = vld [vmem:[#allocation2 + $0x74] sm:$0xf0]  ;;  %v2139_v12 = vor.u32 %v2748_v5, %v2138_v4 }
  0x3c   : > { %1227 = vmatpush.bf16.msra.mxu0 %v2864_v20  ;;  %v2747_v10 = vld [vmem:[#allocation2 + $0x6c] sm:$0xf]  ;;  %v2148_v11 = vld [vmem:[#allocation2 + $0x78] sm:$0xf0]  ;;  %v2143_v13 = vor.u32 %v2746_v6, %v2140_v7  ;;  %v2147_v14 = vor.u32 %v2749_v9, %v2146_v8  ;;  %v2154_v16 = vld [vmem:[#allocation2 + $0x80] sm:$0xf] }
  0x3d   : > { %1396 = vmatpush.bf16.msra.mxu1 %v2872_v21  ;;  %v2151_v15 = vor.u32 %v2747_v10, %v2148_v11  ;;  %v2752_v17 = vld [vmem:[#allocation2 + $0x8c] sm:$0xf0]  ;;  %v2750_v18 = vld [vmem:[#allocation2 + $0x84] sm:$0xf]  ;;  %v2156_v19 = vld [vmem:[#allocation2 + $0x90] sm:$0xf0] }
  0x3e   : > { %1565 = vmatpush.bf16.msra.mxu2 %v2880_v22  ;;  %v2162_v20 = vld [vmem:[#allocation2 + $0x88] sm:$0xf]  ;;  %v2753_v21 = vld [vmem:[#allocation2 + $0x94] sm:$0xf0]  ;;  %v2751_v22 = vld [vmem:[#allocation2 + $0x8c] sm:$0xf] }
  0x3f   : > { %1734 = vmatpush.bf16.msra.mxu3 %v2888_v23  ;;  %v2164_v23 = vld [vmem:[#allocation2 + $0x98] sm:$0xf0]  ;;  %v2178_v32 = vld [vmem:[#allocation2 + $0xa8] sm:$0xf]  ;;  %v2757_v33 = vld [vmem:[#allocation2 + $0xb4] sm:$0xf0] }
  0x40   : > { %1228 = vmatpush.bf16.msra.mxu0 %v2863_v24  ;;  %v2155_v24 = vor.u32 %v2752_v17, %v2154_v16  ;;  %v2755_v34 = vld [vmem:[#allocation2 + $0xac] sm:$0xf]  ;;  %v2180_v35 = vld [vmem:[#allocation2 + $0xb8] sm:$0xf0]  ;;  %v2179_v38 = vor.u32 %v2757_v33, %v2178_v32  ;;  %v2194_v44 = vld [vmem:[#allocation2 + $0xc8] sm:$0xf] }
  0x41   : > { %1397 = vmatpush.bf16.msra.mxu1 %v2871_v25  ;;  %v2159_v25 = vor.u32 %v2750_v18, %v2156_v19  ;;  %v2183_v39 = vor.u32 %v2755_v34, %v2180_v35  ;;  %v2761_v45 = vld [vmem:[#allocation2 + $0xd4] sm:$0xf0]  ;;  %v2759_v46 = vld [vmem:[#allocation2 + $0xcc] sm:$0xf]  ;;  %v2196_v47 = vld [vmem:[#allocation2 + $0xd8] sm:$0xf0] }
  0x42   : > { %1566 = vmatpush.bf16.msra.mxu2 %v2879_v26  ;;  %v2163_v26 = vor.u32 %v2753_v21, %v2162_v20  ;;  %v2195_v50 = vor.u32 %v2761_v45, %v2194_v44  ;;  %v2199_v51 = vor.u32 %v2759_v46, %v2196_v47  ;;  %v2210_v56 = vld [vmem:[#allocation2 + $0xe8] sm:$0xf]  ;;  %v2765_v57 = vld [vmem:[#allocation2 + $0xf4] sm:$0xf0]  ;;  %v2763_v58 = vld [vmem:[#allocation2 + $0xec] sm:$0xf] }
  0x43   : > { %1735 = vmatpush.bf16.msra.mxu3 %v2887_v27  ;;  %v2167_v27 = vor.u32 %v2751_v22, %v2164_v23  ;;  %v2212_v59 = vld [vmem:[#allocation2 + $0xf8] sm:$0xf0]  ;;  %v2211_v62 = vor.u32 %v2765_v57, %v2210_v56  ;;  %v2226_v4 = vld [vmem:[#allocation2 + $0x108] sm:$0xf]  ;;  %v2769_v5 = vld [vmem:[#allocation2 + $0x114] sm:$0xf0] }
  0x44   : > { %1229 = vmatpush.bf16.msra.mxu0 %v2862_v28  ;;  %v2170_v28 = vld [vmem:[#allocation2 + $0xa0] sm:$0xf]  ;;  %v2215_v63 = vor.u32 %v2763_v58, %v2212_v59  ;;  %v2767_v6 = vld [vmem:[#allocation2 + $0x10c] sm:$0xf]  ;;  %v2228_v7 = vld [vmem:[#allocation2 + $0x118] sm:$0xf0] }
  0x45   : > { %1398 = vmatpush.bf16.msra.mxu1 %v2870_v29  ;;  %v2756_v29 = vld [vmem:[#allocation2 + $0xac] sm:$0xf0]  ;;  %v2234_v21 = vld [vmem:[#allocation2 + $0x120] sm:$0xf]  ;;  %v2770_v23 = vld [vmem:[#allocation2 + $0x124] sm:$0xf] }
  0x46   : > { %1567 = vmatpush.bf16.msra.mxu2 %v2878_v30  ;;  %v2754_v30 = vld [vmem:[#allocation2 + $0xa4] sm:$0xf]  ;;  %v2171_v36 = vor.u32 %v2756_v29, %v2170_v28  ;;  %v2772_v22 = vld [vmem:[#allocation2 + $0x12c] sm:$0xf0]  ;;  %v2244_v28 = vld [vmem:[#allocation2 + $0x138] sm:$0xf0] }
  0x47   : > { %1736 = vmatpush.bf16.msra.mxu3 %v2886_v31  ;;  %1230 = vmatmul.bf16.vlgmr.msra.gmra.mxu0 %v2091_v40  ;;  %v2172_v31 = vld [vmem:[#allocation2 + $0xb0] sm:$0xf0]  ;;  %v2186_v40 = vld [vmem:[#allocation2 + $0xc0] sm:$0xf]  ;;  %v2235_v32 = vor.u32 %v2772_v22, %v2234_v21 }
  0x48   : > { %1399 = vmatmul.bf16.vlgmr.msra.gmra.mxu1 %v2095_v41  ;;  %v2175_v37 = vor.u32 %v2754_v30, %v2172_v31  ;;  %v2760_v41 = vld [vmem:[#allocation2 + $0xcc] sm:$0xf0]  ;;  %v2250_v47 = vld [vmem:[#allocation2 + $0x140] sm:$0xf] }
  0x49   : > { %1568 = vmatmul.bf16.vlgmr.msra.gmra.mxu2 %v2099_v42  ;;  %v2758_v42 = vld [vmem:[#allocation2 + $0xc4] sm:$0xf]  ;;  %v2187_v48 = vor.u32 %v2760_v41, %v2186_v40 }
  0x4a   : > { %1737 = vmatmul.bf16.vlgmr.msra.gmra.mxu3 %v2103_v43  ;;  %v2188_v43 = vld [vmem:[#allocation2 + $0xd0] sm:$0xf0] }
  0x4b   : > { %v2191_v49 = vor.u32 %v2758_v42, %v2188_v43 }
  0x57   : > { %1235 = vmatmul.bf16.gmra.mxu0 %v2107_v52  ;;  %v2202_v52 = vld [vmem:[#allocation2 + $0xe0] sm:$0xf] }
  0x58   : > { %1404 = vmatmul.bf16.gmra.mxu1 %v2111_v53  ;;  %v2764_v53 = vld [vmem:[#allocation2 + $0xec] sm:$0xf0] }
  0x59   : > { %1573 = vmatmul.bf16.gmra.mxu2 %v2115_v54  ;;  %v2762_v54 = vld [vmem:[#allocation2 + $0xe4] sm:$0xf]  ;;  %v2203_v60 = vor.u32 %v2764_v53, %v2202_v52  ;;  %v2777_v52 = vld [vmem:[#allocation2 + $0x154] sm:$0xf0]  ;;  %v2775_v53 = vld [vmem:[#allocation2 + $0x14c] sm:$0xf] }
  0x5a   : > { %1742 = vmatmul.bf16.gmra.mxu3 %v2119_v55  ;;  %v2204_v55 = vld [vmem:[#allocation2 + $0xf0] sm:$0xf0] }
  0x5b   : > { %v2207_v61 = vor.u32 %v2762_v54, %v2204_v55  ;;  %v2260_v54 = vld [vmem:[#allocation2 + $0x158] sm:$0xf0] }
  0x67   : > { %1240 = vmatmul.bf16.gmra.mxu0 %v2123_v0  ;;  %v2218_v0 = vld [vmem:[#allocation2 + $0x100] sm:$0xf] }
  0x68   : > { %1409 = vmatmul.bf16.gmra.mxu1 %v2127_v1  ;;  %v2768_v1 = vld [vmem:[#allocation2 + $0x10c] sm:$0xf0] }
  0x69   : > { %1578 = vmatmul.bf16.gmra.mxu2 %v2131_v2  ;;  %v2766_v2 = vld [vmem:[#allocation2 + $0x104] sm:$0xf]  ;;  %v2219_v8 = vor.u32 %v2768_v1, %v2218_v0  ;;  %v2263_v0 = vor.u32 %v2775_v53, %v2260_v54 }
  0x6a   : > { %1747 = vmatmul.bf16.gmra.mxu3 %v2135_v3  ;;  %v2220_v3 = vld [vmem:[#allocation2 + $0x110] sm:$0xf0] }
  0x6b   : > { %v2223_v9 = vor.u32 %v2766_v2, %v2220_v3 }
  0x77   : > { %1245 = vmatmul.bf16.gmra.mxu0 %v2139_v12  ;;  %v2227_v12 = vor.u32 %v2769_v5, %v2226_v4 }
  0x78   : > { %1414 = vmatmul.bf16.gmra.mxu1 %v2143_v13  ;;  %v2231_v13 = vor.u32 %v2767_v6, %v2228_v7 }
  0x79   : > { %1583 = vmatmul.bf16.gmra.mxu2 %v2147_v14 }
  0x7a   : > { %1752 = vmatmul.bf16.gmra.mxu3 %v2151_v15 }
  0x87   : > { %1250 = vmatmul.bf16.gmra.mxu0 %v2155_v24  ;;  %v2236_v24 = vld [vmem:[#allocation2 + $0x130] sm:$0xf0] }
  0x88   : > { %1419 = vmatmul.bf16.gmra.mxu1 %v2159_v25  ;;  %v2242_v25 = vld [vmem:[#allocation2 + $0x128] sm:$0xf]  ;;  %v2239_v33 = vor.u32 %v2770_v23, %v2236_v24 }
  0x89   : > { %1588 = vmatmul.bf16.gmra.mxu2 %v2163_v26  ;;  %v2773_v26 = vld [vmem:[#allocation2 + $0x134] sm:$0xf0] }
  0x8a   : > { %1757 = vmatmul.bf16.gmra.mxu3 %v2167_v27  ;;  %v2771_v27 = vld [vmem:[#allocation2 + $0x12c] sm:$0xf] }
  0x97   : > { %1255 = vmatmul.bf16.gmra.mxu0 %v2171_v36 }
  0x98   : > { %1424 = vmatmul.bf16.gmra.mxu1 %v2175_v37  ;;  %v2243_v37 = vor.u32 %v2773_v26, %v2242_v25 }
  0x99   : > { %1593 = vmatmul.bf16.gmra.mxu2 %v2179_v38  ;;  %v2247_v38 = vor.u32 %v2771_v27, %v2244_v28 }
  0x9a   : > { %1762 = vmatmul.bf16.gmra.mxu3 %v2183_v39 }
  0xa7   : > { %1260 = vmatmul.bf16.gmra.mxu0 %v2187_v48  ;;  %v2776_v48 = vld [vmem:[#allocation2 + $0x14c] sm:$0xf0] }
  0xa8   : > { %1429 = vmatmul.bf16.gmra.mxu1 %v2191_v49  ;;  %v2774_v49 = vld [vmem:[#allocation2 + $0x144] sm:$0xf]  ;;  %v2251_v58 = vor.u32 %v2776_v48, %v2250_v47 }
  0xa9   : > { %1598 = vmatmul.bf16.gmra.mxu2 %v2195_v50  ;;  %v2252_v50 = vld [vmem:[#allocation2 + $0x150] sm:$0xf0] }
  0xaa   : > { %1767 = vmatmul.bf16.gmra.mxu3 %v2199_v51  ;;  %v2258_v51 = vld [vmem:[#allocation2 + $0x148] sm:$0xf]  ;;  %v2255_v59 = vor.u32 %v2774_v49, %v2252_v50 }
  0xb7   : > { %1265 = vmatmul.bf16.gmra.mxu0 %v2203_v60 }
  0xb8   : > { %1434 = vmatmul.bf16.gmra.mxu1 %v2207_v61 }
  0xb9   : > { %1603 = vmatmul.bf16.gmra.mxu2 %v2211_v62 }
  0xba   : > { %1772 = vmatmul.bf16.gmra.mxu3 %v2215_v63  ;;  %v2259_v63 = vor.u32 %v2777_v52, %v2258_v51 }
  0xc4   : > { %v1231_v10 = vpop.f32.mrf.mxu0 }
  0xc5   : > { %v1400_v11 = vpop.f32.mrf.mxu1 }
  0xc6   : > { %v1401_v14 = vadd.f32 %v1400_v11, %v1231_v10  ;;  %v2780_v10 = vld [vmem:[#allocation2 + $0x16c] sm:$0xf0]  ;;  %v2778_v11 = vld [vmem:[#allocation2 + $0x164] sm:$0xf] }
  0xc7   : > { %1270 = vmatmul.bf16.gmra.mxu0 %v2219_v8 }
  0xc8   : > { %1439 = vmatmul.bf16.gmra.mxu1 %v2223_v9  ;;  %v2266_v9 = vld [vmem:[#allocation2 + $0x160] sm:$0xf] }
  0xc9   : > { %1608 = vmatmul.bf16.gmra.mxu2 %v2227_v12  ;;  %v2268_v12 = vld [vmem:[#allocation2 + $0x170] sm:$0xf0] }
  0xca   : > { %1777 = vmatmul.bf16.gmra.mxu3 %v2231_v13  ;;  %v2274_v13 = vld [vmem:[#allocation2 + $0x168] sm:$0xf]  ;;  %v2271_v21 = vor.u32 %v2778_v11, %v2268_v12 }
  0xcc   : > { %v1569_v15 = vpop.f32.mrf.mxu2  ;;  %v1233_v18 = vpop.f32.mrf.mxu0 }
  0xcd   : > { %v1738_v16 = vpop.f32.mrf.mxu3  ;;  %v1570_v17 = vadd.f32 %v1569_v15, %v1401_v14  ;;  %v1402_v19 = vpop.f32.mrf.mxu1  ;;  %v2781_v14 = vld [vmem:[#allocation2 + $0x174] sm:$0xf0]  ;;  %v2779_v15 = vld [vmem:[#allocation2 + $0x16c] sm:$0xf] }
  0xce   : > { %v1403_v29 = vadd.f32 %v1402_v19, %v1233_v18  ;;  %v2275_v25 = vor.u32 %v2781_v14, %v2274_v13 }
  0xcf   : > { %v1739_v20 = vadd.f32 %v1738_v16, %v1570_v17  ;;  %v2276_v16 = vld [vmem:[#allocation2 + $0x178] sm:$0xf0] }
  0xd0   : > { %v2279_v26 = vor.u32 %v2779_v15, %v2276_v16 }
  0xd1   : > { %1898 = vst [vmem:[%s3290_s19] sm:$0xff] %v1739_v20  ;;  %v2267_v20 = vor.u32 %v2780_v10, %v2266_v9 }
  0xd4   : > { %v1571_v30 = vpop.f32.mrf.mxu2  ;;  %v1236_v35 = vpop.f32.mrf.mxu0 }
  0xd5   : > { %v1740_v31 = vpop.f32.mrf.mxu3  ;;  %v1572_v34 = vadd.f32 %v1571_v30, %v1403_v29  ;;  %v1405_v36 = vpop.f32.mrf.mxu1 }
  0xd6   : > { %v1406_v40 = vadd.f32 %v1405_v36, %v1236_v35  ;;  %v2282_v35 = vld [vmem:[#allocation2 + $0x180] sm:$0xf]  ;;  %v2784_v36 = vld [vmem:[#allocation2 + $0x18c] sm:$0xf0] }
  0xd7   : > { %v1741_v39 = vadd.f32 %v1740_v31, %v1572_v34  ;;  %1275 = vmatmul.bf16.gmra.mxu0 %v2235_v32 }
  0xd8   : > { %1444 = vmatmul.bf16.gmra.mxu1 %v2239_v33 }
  0xd9   : > { %1899 = vst [vmem:[%s3290_s19 + $0x8] sm:$0xff] %v1741_v39  ;;  %1613 = vmatmul.bf16.gmra.mxu2 %v2243_v37  ;;  %v2782_v37 = vld [vmem:[#allocation2 + $0x184] sm:$0xf]  ;;  %v2290_v39 = vld [vmem:[#allocation2 + $0x188] sm:$0xf] }
  0xda   : > { %1782 = vmatmul.bf16.gmra.mxu3 %v2247_v38  ;;  %v2284_v38 = vld [vmem:[#allocation2 + $0x190] sm:$0xf0] }
  0xdb   : > { %v2287_v47 = vor.u32 %v2782_v37, %v2284_v38 }
  0xdc   : > { %v1574_v41 = vpop.f32.mrf.mxu2  ;;  %v1238_v44 = vpop.f32.mrf.mxu0 }
  0xdd   : > { %v1743_v42 = vpop.f32.mrf.mxu3  ;;  %v1575_v43 = vadd.f32 %v1574_v41, %v1406_v40  ;;  %v1407_v45 = vpop.f32.mrf.mxu1  ;;  %v2785_v40 = vld [vmem:[#allocation2 + $0x194] sm:$0xf0]  ;;  %v2783_v41 = vld [vmem:[#allocation2 + $0x18c] sm:$0xf] }
  0xde   : > { %v1408_v55 = vadd.f32 %v1407_v45, %v1238_v44  ;;  %v2291_v51 = vor.u32 %v2785_v40, %v2290_v39 }
  0xdf   : > { %v1744_v46 = vadd.f32 %v1743_v42, %v1575_v43  ;;  %v2292_v42 = vld [vmem:[#allocation2 + $0x198] sm:$0xf0] }
  0xe0   : > { %v2295_v52 = vor.u32 %v2783_v41, %v2292_v42 }
  0xe1   : > { %1900 = vst [vmem:[%s3290_s19 + $0x10] sm:$0xff] %v1744_v46  ;;  %v2283_v46 = vor.u32 %v2784_v36, %v2282_v35 }
  0xe4   : > { %v1576_v56 = vpop.f32.mrf.mxu2  ;;  %v1241_v61 = vpop.f32.mrf.mxu0 }
  0xe5   : > { %v1745_v57 = vpop.f32.mrf.mxu3  ;;  %v1577_v60 = vadd.f32 %v1576_v56, %v1408_v55  ;;  %v1410_v62 = vpop.f32.mrf.mxu1 }
  0xe6   : > { %v1411_v2 = vadd.f32 %v1410_v62, %v1241_v61  ;;  %v2298_v61 = vld [vmem:[#allocation2 + $0x1a0] sm:$0xf]  ;;  %v2788_v62 = vld [vmem:[#allocation2 + $0x1ac] sm:$0xf0] }
  0xe7   : > { %v1746_v1 = vadd.f32 %v1745_v57, %v1577_v60  ;;  %1280 = vmatmul.bf16.gmra.mxu0 %v2251_v58 }
  0xe8   : > { %1449 = vmatmul.bf16.gmra.mxu1 %v2255_v59 }
  0xe9   : > { %1901 = vst [vmem:[%s3290_s19 + $0x18] sm:$0xff] %v1746_v1  ;;  %1618 = vmatmul.bf16.gmra.mxu2 %v2259_v63  ;;  %v2786_v63 = vld [vmem:[#allocation2 + $0x1a4] sm:$0xf]  ;;  %v2306_v1 = vld [vmem:[#allocation2 + $0x1a8] sm:$0xf] }
  0xea   : > { %1787 = vmatmul.bf16.gmra.mxu3 %v2263_v0  ;;  %v2300_v0 = vld [vmem:[#allocation2 + $0x1b0] sm:$0xf0] }
  0xeb   : > { %v2303_v9 = vor.u32 %v2786_v63, %v2300_v0 }
  0xec   : > { %v1579_v3 = vpop.f32.mrf.mxu2  ;;  %v1243_v6 = vpop.f32.mrf.mxu0 }
  0xed   : > { %v1748_v4 = vpop.f32.mrf.mxu3  ;;  %v1580_v5 = vadd.f32 %v1579_v3, %v1411_v2  ;;  %v1412_v7 = vpop.f32.mrf.mxu1  ;;  %v2789_v2 = vld [vmem:[#allocation2 + $0x1b4] sm:$0xf0]  ;;  %v2787_v3 = vld [vmem:[#allocation2 + $0x1ac] sm:$0xf] }
  0xee   : > { %v1413_v17 = vadd.f32 %v1412_v7, %v1243_v6  ;;  %v2307_v13 = vor.u32 %v2789_v2, %v2306_v1 }
  0xef   : > { %v1749_v8 = vadd.f32 %v1748_v4, %v1580_v5  ;;  %v2308_v4 = vld [vmem:[#allocation2 + $0x1b8] sm:$0xf0] }
  0xf0   : > { %v2311_v14 = vor.u32 %v2787_v3, %v2308_v4 }
  0xf1   : > { %1902 = vst [vmem:[%s3290_s19 + $0x20] sm:$0xff] %v1749_v8  ;;  %v2299_v8 = vor.u32 %v2788_v62, %v2298_v61 }
  0xf4   : > { %v1581_v18 = vpop.f32.mrf.mxu2  ;;  %v1246_v23 = vpop.f32.mrf.mxu0 }
  0xf5   : > { %v1750_v19 = vpop.f32.mrf.mxu3  ;;  %v1582_v22 = vadd.f32 %v1581_v18, %v1413_v17  ;;  %v1415_v24 = vpop.f32.mrf.mxu1 }
  0xf6   : > { %v1416_v28 = vadd.f32 %v1415_v24, %v1246_v23  ;;  %v2314_v23 = vld [vmem:[#allocation2 + $0x1c0] sm:$0xf]  ;;  %v2792_v24 = vld [vmem:[#allocation2 + $0x1cc] sm:$0xf0] }
  0xf7   : > { %v1751_v27 = vadd.f32 %v1750_v19, %v1582_v22  ;;  %1285 = vmatmul.bf16.gmra.mxu0 %v2267_v20 }
  0xf8   : > { %1454 = vmatmul.bf16.gmra.mxu1 %v2271_v21 }
  0xf9   : > { %1903 = vst [vmem:[%s3290_s19 + $0x28] sm:$0xff] %v1751_v27  ;;  %1623 = vmatmul.bf16.gmra.mxu2 %v2275_v25  ;;  %v2790_v25 = vld [vmem:[#allocation2 + $0x1c4] sm:$0xf]  ;;  %v2322_v27 = vld [vmem:[#allocation2 + $0x1c8] sm:$0xf] }
  0xfa   : > { %1792 = vmatmul.bf16.gmra.mxu3 %v2279_v26  ;;  %v2316_v26 = vld [vmem:[#allocation2 + $0x1d0] sm:$0xf0] }
  0xfb   : > { %v2319_v35 = vor.u32 %v2790_v25, %v2316_v26 }
  0xfc   : > { %v1584_v29 = vpop.f32.mrf.mxu2  ;;  %v1248_v32 = vpop.f32.mrf.mxu0 }
  0xfd   : > { %v1753_v30 = vpop.f32.mrf.mxu3  ;;  %v1585_v31 = vadd.f32 %v1584_v29, %v1416_v28  ;;  %v1417_v33 = vpop.f32.mrf.mxu1  ;;  %v2793_v28 = vld [vmem:[#allocation2 + $0x1d4] sm:$0xf0]  ;;  %v2791_v29 = vld [vmem:[#allocation2 + $0x1cc] sm:$0xf] }
  0xfe   : > { %v1418_v43 = vadd.f32 %v1417_v33, %v1248_v32  ;;  %v2323_v39 = vor.u32 %v2793_v28, %v2322_v27 }
  0xff   : > { %v1754_v34 = vadd.f32 %v1753_v30, %v1585_v31  ;;  %v2324_v30 = vld [vmem:[#allocation2 + $0x1d8] sm:$0xf0] }
 0x100   : > { %v2327_v40 = vor.u32 %v2791_v29, %v2324_v30 }
 0x101   : > { %1904 = vst [vmem:[%s3290_s19 + $0x30] sm:$0xff] %v1754_v34  ;;  %v2315_v34 = vor.u32 %v2792_v24, %v2314_v23 }
 0x104   : > { %v1586_v44 = vpop.f32.mrf.mxu2  ;;  %v1251_v49 = vpop.f32.mrf.mxu0 }
 0x105   : > { %v1755_v45 = vpop.f32.mrf.mxu3  ;;  %v1587_v48 = vadd.f32 %v1586_v44, %v1418_v43  ;;  %v1420_v50 = vpop.f32.mrf.mxu1 }
 0x106   : > { %v1421_v54 = vadd.f32 %v1420_v50, %v1251_v49  ;;  %v2330_v49 = vld [vmem:[#allocation2 + $0x1e0] sm:$0xf]  ;;  %v2796_v50 = vld [vmem:[#allocation2 + $0x1ec] sm:$0xf0] }
 0x107   : > { %v1756_v53 = vadd.f32 %v1755_v45, %v1587_v48  ;;  %1290 = vmatmul.bf16.gmra.mxu0 %v2283_v46 }
 0x108   : > { %1459 = vmatmul.bf16.gmra.mxu1 %v2287_v47 }
 0x109   : > { %1905 = vst [vmem:[%s3290_s19 + $0x38] sm:$0xff] %v1756_v53  ;;  %1628 = vmatmul.bf16.gmra.mxu2 %v2291_v51  ;;  %v2794_v51 = vld [vmem:[#allocation2 + $0x1e4] sm:$0xf]  ;;  %v2338_v53 = vld [vmem:[#allocation2 + $0x1e8] sm:$0xf] }
 0x10a   : > { %1797 = vmatmul.bf16.gmra.mxu3 %v2295_v52  ;;  %v2332_v52 = vld [vmem:[#allocation2 + $0x1f0] sm:$0xf0] }
 0x10b   : > { %v2335_v61 = vor.u32 %v2794_v51, %v2332_v52 }
 0x10c   : > { %v1589_v55 = vpop.f32.mrf.mxu2  ;;  %v1253_v58 = vpop.f32.mrf.mxu0 }
 0x10d   : > { %v1758_v56 = vpop.f32.mrf.mxu3  ;;  %v1590_v57 = vadd.f32 %v1589_v55, %v1421_v54  ;;  %v1422_v59 = vpop.f32.mrf.mxu1  ;;  %v2797_v54 = vld [vmem:[#allocation2 + $0x1f4] sm:$0xf0]  ;;  %v2795_v55 = vld [vmem:[#allocation2 + $0x1ec] sm:$0xf] }
 0x10e   : > { %v1423_v5 = vadd.f32 %v1422_v59, %v1253_v58  ;;  %v2339_v1 = vor.u32 %v2797_v54, %v2338_v53 }
 0x10f   : > { %v1759_v60 = vadd.f32 %v1758_v56, %v1590_v57  ;;  %v2340_v56 = vld [vmem:[#allocation2 + $0x1f8] sm:$0xf0] }
 0x110   : > { %v2343_v2 = vor.u32 %v2795_v55, %v2340_v56 }
 0x111   : > { %1906 = vst [vmem:[%s3290_s19 + $0x40] sm:$0xff] %v1759_v60  ;;  %v2331_v60 = vor.u32 %v2796_v50, %v2330_v49 }
 0x114   : > { %v1591_v6 = vpop.f32.mrf.mxu2  ;;  %v1256_v11 = vpop.f32.mrf.mxu0 }
 0x115   : > { %v1760_v7 = vpop.f32.mrf.mxu3  ;;  %v1592_v10 = vadd.f32 %v1591_v6, %v1423_v5  ;;  %v1425_v12 = vpop.f32.mrf.mxu1 }
 0x116   : > { %v1426_v16 = vadd.f32 %v1425_v12, %v1256_v11  ;;  %v2346_v11 = vld [vmem:[#allocation2 + $0x200] sm:$0xf]  ;;  %v2800_v12 = vld [vmem:[#allocation2 + $0x20c] sm:$0xf0] }
 0x117   : > { %v1761_v15 = vadd.f32 %v1760_v7, %v1592_v10  ;;  %1295 = vmatmul.bf16.gmra.mxu0 %v2299_v8 }
 0x118   : > { %1464 = vmatmul.bf16.gmra.mxu1 %v2303_v9 }
 0x119   : > { %1907 = vst [vmem:[%s3290_s19 + $0x48] sm:$0xff] %v1761_v15  ;;  %1633 = vmatmul.bf16.gmra.mxu2 %v2307_v13  ;;  %v2798_v13 = vld [vmem:[#allocation2 + $0x204] sm:$0xf]  ;;  %v2354_v15 = vld [vmem:[#allocation2 + $0x208] sm:$0xf] }
 0x11a   : > { %1802 = vmatmul.bf16.gmra.mxu3 %v2311_v14  ;;  %v2348_v14 = vld [vmem:[#allocation2 + $0x210] sm:$0xf0] }
 0x11b   : > { %v2351_v23 = vor.u32 %v2798_v13, %v2348_v14 }
 0x11c   : > { %v1594_v17 = vpop.f32.mrf.mxu2  ;;  %v1258_v20 = vpop.f32.mrf.mxu0 }
 0x11d   : > { %v1763_v18 = vpop.f32.mrf.mxu3  ;;  %v1595_v19 = vadd.f32 %v1594_v17, %v1426_v16  ;;  %v1427_v21 = vpop.f32.mrf.mxu1  ;;  %v2801_v16 = vld [vmem:[#allocation2 + $0x214] sm:$0xf0]  ;;  %v2799_v17 = vld [vmem:[#allocation2 + $0x20c] sm:$0xf] }
 0x11e   : > { %v1428_v31 = vadd.f32 %v1427_v21, %v1258_v20  ;;  %v2355_v27 = vor.u32 %v2801_v16, %v2354_v15 }
 0x11f   : > { %v1764_v22 = vadd.f32 %v1763_v18, %v1595_v19  ;;  %v2356_v18 = vld [vmem:[#allocation2 + $0x218] sm:$0xf0] }
 0x120   : > { %v2359_v28 = vor.u32 %v2799_v17, %v2356_v18 }
 0x121   : > { %1908 = vst [vmem:[%s3290_s19 + $0x50] sm:$0xff] %v1764_v22  ;;  %v2347_v22 = vor.u32 %v2800_v12, %v2346_v11 }
 0x124   : > { %v1596_v32 = vpop.f32.mrf.mxu2  ;;  %v1261_v37 = vpop.f32.mrf.mxu0 }
 0x125   : > { %v1765_v33 = vpop.f32.mrf.mxu3  ;;  %v1597_v36 = vadd.f32 %v1596_v32, %v1428_v31  ;;  %v1430_v38 = vpop.f32.mrf.mxu1 }
 0x126   : > { %v1431_v42 = vadd.f32 %v1430_v38, %v1261_v37  ;;  %v2362_v37 = vld [vmem:[#allocation2 + $0x220] sm:$0xf]  ;;  %v2804_v38 = vld [vmem:[#allocation2 + $0x22c] sm:$0xf0] }
 0x127   : > { %v1766_v41 = vadd.f32 %v1765_v33, %v1597_v36  ;;  %1300 = vmatmul.bf16.gmra.mxu0 %v2315_v34 }
 0x128   : > { %1469 = vmatmul.bf16.gmra.mxu1 %v2319_v35 }
 0x129   : > { %1909 = vst [vmem:[%s3290_s19 + $0x58] sm:$0xff] %v1766_v41  ;;  %1638 = vmatmul.bf16.gmra.mxu2 %v2323_v39  ;;  %v2802_v39 = vld [vmem:[#allocation2 + $0x224] sm:$0xf]  ;;  %v2370_v41 = vld [vmem:[#allocation2 + $0x228] sm:$0xf] }
 0x12a   : > { %1807 = vmatmul.bf16.gmra.mxu3 %v2327_v40  ;;  %v2364_v40 = vld [vmem:[#allocation2 + $0x230] sm:$0xf0] }
 0x12b   : > { %v2367_v49 = vor.u32 %v2802_v39, %v2364_v40 }
 0x12c   : > { %v1599_v43 = vpop.f32.mrf.mxu2  ;;  %v1263_v46 = vpop.f32.mrf.mxu0 }
 0x12d   : > { %v1768_v44 = vpop.f32.mrf.mxu3  ;;  %v1600_v45 = vadd.f32 %v1599_v43, %v1431_v42  ;;  %v1432_v47 = vpop.f32.mrf.mxu1  ;;  %v2805_v42 = vld [vmem:[#allocation2 + $0x234] sm:$0xf0]  ;;  %v2803_v43 = vld [vmem:[#allocation2 + $0x22c] sm:$0xf] }
 0x12e   : > { %v1433_v57 = vadd.f32 %v1432_v47, %v1263_v46  ;;  %v2371_v53 = vor.u32 %v2805_v42, %v2370_v41 }
 0x12f   : > { %v1769_v48 = vadd.f32 %v1768_v44, %v1600_v45  ;;  %v2372_v44 = vld [vmem:[#allocation2 + $0x238] sm:$0xf0] }
 0x130   : > { %v2375_v54 = vor.u32 %v2803_v43, %v2372_v44 }
 0x131   : > { %1910 = vst [vmem:[%s3290_s19 + $0x60] sm:$0xff] %v1769_v48  ;;  %v2363_v48 = vor.u32 %v2804_v38, %v2362_v37 }
 0x134   : > { %v1601_v58 = vpop.f32.mrf.mxu2  ;;  %v1266_v63 = vpop.f32.mrf.mxu0 }
 0x135   : > { %v1770_v59 = vpop.f32.mrf.mxu3  ;;  %v1602_v62 = vadd.f32 %v1601_v58, %v1433_v57  ;;  %v1435_v0 = vpop.f32.mrf.mxu1 }
 0x136   : > { %v1436_v4 = vadd.f32 %v1435_v0, %v1266_v63  ;;  %v2378_v63 = vld [vmem:[#allocation2 + $0x240] sm:$0xf]  ;;  %v2808_v0 = vld [vmem:[#allocation2 + $0x24c] sm:$0xf0] }
 0x137   : > { %v1771_v3 = vadd.f32 %v1770_v59, %v1602_v62  ;;  %1305 = vmatmul.bf16.gmra.mxu0 %v2331_v60 }
 0x138   : > { %1474 = vmatmul.bf16.gmra.mxu1 %v2335_v61 }
 0x139   : > { %1911 = vst [vmem:[%s3290_s19 + $0x68] sm:$0xff] %v1771_v3  ;;  %1643 = vmatmul.bf16.gmra.mxu2 %v2339_v1  ;;  %v2806_v1 = vld [vmem:[#allocation2 + $0x244] sm:$0xf]  ;;  %v2386_v3 = vld [vmem:[#allocation2 + $0x248] sm:$0xf] }
 0x13a   : > { %1812 = vmatmul.bf16.gmra.mxu3 %v2343_v2  ;;  %v2380_v2 = vld [vmem:[#allocation2 + $0x250] sm:$0xf0] }
 0x13b   : > { %v2383_v11 = vor.u32 %v2806_v1, %v2380_v2 }
 0x13c   : > { %v1604_v5 = vpop.f32.mrf.mxu2  ;;  %v1268_v8 = vpop.f32.mrf.mxu0 }
 0x13d   : > { %v1773_v6 = vpop.f32.mrf.mxu3  ;;  %v1605_v7 = vadd.f32 %v1604_v5, %v1436_v4  ;;  %v1437_v9 = vpop.f32.mrf.mxu1  ;;  %v2809_v4 = vld [vmem:[#allocation2 + $0x254] sm:$0xf0]  ;;  %v2807_v5 = vld [vmem:[#allocation2 + $0x24c] sm:$0xf] }
 0x13e   : > { %v1438_v19 = vadd.f32 %v1437_v9, %v1268_v8  ;;  %v2387_v15 = vor.u32 %v2809_v4, %v2386_v3 }
 0x13f   : > { %v1774_v10 = vadd.f32 %v1773_v6, %v1605_v7  ;;  %v2388_v6 = vld [vmem:[#allocation2 + $0x258] sm:$0xf0] }
 0x140   : > { %v2391_v16 = vor.u32 %v2807_v5, %v2388_v6 }
 0x141   : > { %1912 = vst [vmem:[%s3290_s19 + $0x70] sm:$0xff] %v1774_v10  ;;  %v2379_v10 = vor.u32 %v2808_v0, %v2378_v63 }
 0x144   : > { %v1606_v20 = vpop.f32.mrf.mxu2  ;;  %v1271_v25 = vpop.f32.mrf.mxu0 }
 0x145   : > { %v1775_v21 = vpop.f32.mrf.mxu3  ;;  %v1607_v24 = vadd.f32 %v1606_v20, %v1438_v19  ;;  %v1440_v26 = vpop.f32.mrf.mxu1 }
 0x146   : > { %v1441_v30 = vadd.f32 %v1440_v26, %v1271_v25  ;;  %v2394_v25 = vld [vmem:[#allocation2 + $0x260] sm:$0xf]  ;;  %v2812_v26 = vld [vmem:[#allocation2 + $0x26c] sm:$0xf0] }
 0x147   : > { %v1776_v29 = vadd.f32 %v1775_v21, %v1607_v24  ;;  %1310 = vmatmul.bf16.gmra.mxu0 %v2347_v22 }
 0x148   : > { %1479 = vmatmul.bf16.gmra.mxu1 %v2351_v23 }
 0x149   : > { %1913 = vst [vmem:[%s3290_s19 + $0x78] sm:$0xff] %v1776_v29  ;;  %1648 = vmatmul.bf16.gmra.mxu2 %v2355_v27  ;;  %v2810_v27 = vld [vmem:[#allocation2 + $0x264] sm:$0xf]  ;;  %v2402_v29 = vld [vmem:[#allocation2 + $0x268] sm:$0xf] }
 0x14a   : > { %1817 = vmatmul.bf16.gmra.mxu3 %v2359_v28  ;;  %v2396_v28 = vld [vmem:[#allocation2 + $0x270] sm:$0xf0] }
 0x14b   : > { %v2399_v37 = vor.u32 %v2810_v27, %v2396_v28 }
 0x14c   : > { %v1609_v31 = vpop.f32.mrf.mxu2  ;;  %v1273_v34 = vpop.f32.mrf.mxu0 }
 0x14d   : > { %v1778_v32 = vpop.f32.mrf.mxu3  ;;  %v1610_v33 = vadd.f32 %v1609_v31, %v1441_v30  ;;  %v1442_v35 = vpop.f32.mrf.mxu1  ;;  %v2813_v30 = vld [vmem:[#allocation2 + $0x274] sm:$0xf0]  ;;  %v2811_v31 = vld [vmem:[#allocation2 + $0x26c] sm:$0xf] }
 0x14e   : > { %v1443_v45 = vadd.f32 %v1442_v35, %v1273_v34  ;;  %v2403_v41 = vor.u32 %v2813_v30, %v2402_v29 }
 0x14f   : > { %v1779_v36 = vadd.f32 %v1778_v32, %v1610_v33  ;;  %v2404_v32 = vld [vmem:[#allocation2 + $0x278] sm:$0xf0] }
 0x150   : > { %v2407_v42 = vor.u32 %v2811_v31, %v2404_v32 }
 0x151   : > { %1914 = vst [vmem:[%s3290_s19 + $0x80] sm:$0xff] %v1779_v36  ;;  %v2395_v36 = vor.u32 %v2812_v26, %v2394_v25 }
 0x154   : > { %v1611_v46 = vpop.f32.mrf.mxu2  ;;  %v1276_v51 = vpop.f32.mrf.mxu0 }
 0x155   : > { %v1780_v47 = vpop.f32.mrf.mxu3  ;;  %v1612_v50 = vadd.f32 %v1611_v46, %v1443_v45  ;;  %v1445_v52 = vpop.f32.mrf.mxu1 }
 0x156   : > { %v1446_v56 = vadd.f32 %v1445_v52, %v1276_v51  ;;  %v2410_v51 = vld [vmem:[#allocation2 + $0x280] sm:$0xf]  ;;  %v2816_v52 = vld [vmem:[#allocation2 + $0x28c] sm:$0xf0] }
 0x157   : > { %v1781_v55 = vadd.f32 %v1780_v47, %v1612_v50  ;;  %1315 = vmatmul.bf16.gmra.mxu0 %v2363_v48 }
 0x158   : > { %1484 = vmatmul.bf16.gmra.mxu1 %v2367_v49 }
 0x159   : > { %1915 = vst [vmem:[%s3290_s19 + $0x88] sm:$0xff] %v1781_v55  ;;  %1653 = vmatmul.bf16.gmra.mxu2 %v2371_v53  ;;  %v2814_v53 = vld [vmem:[#allocation2 + $0x284] sm:$0xf]  ;;  %v2418_v55 = vld [vmem:[#allocation2 + $0x288] sm:$0xf] }
 0x15a   : > { %1822 = vmatmul.bf16.gmra.mxu3 %v2375_v54  ;;  %v2412_v54 = vld [vmem:[#allocation2 + $0x290] sm:$0xf0] }
 0x15b   : > { %v2415_v63 = vor.u32 %v2814_v53, %v2412_v54 }
 0x15c   : > { %v1614_v57 = vpop.f32.mrf.mxu2  ;;  %v1278_v60 = vpop.f32.mrf.mxu0 }
 0x15d   : > { %v1783_v58 = vpop.f32.mrf.mxu3  ;;  %v1615_v59 = vadd.f32 %v1614_v57, %v1446_v56  ;;  %v1447_v61 = vpop.f32.mrf.mxu1  ;;  %v2817_v56 = vld [vmem:[#allocation2 + $0x294] sm:$0xf0]  ;;  %v2815_v57 = vld [vmem:[#allocation2 + $0x28c] sm:$0xf] }
 0x15e   : > { %v1448_v7 = vadd.f32 %v1447_v61, %v1278_v60  ;;  %v2419_v3 = vor.u32 %v2817_v56, %v2418_v55 }
 0x15f   : > { %v1784_v62 = vadd.f32 %v1783_v58, %v1615_v59  ;;  %v2420_v58 = vld [vmem:[#allocation2 + $0x298] sm:$0xf0] }
 0x160   : > { %v2423_v4 = vor.u32 %v2815_v57, %v2420_v58 }
 0x161   : > { %1916 = vst [vmem:[%s3290_s19 + $0x90] sm:$0xff] %v1784_v62  ;;  %v2411_v62 = vor.u32 %v2816_v52, %v2410_v51 }
 0x164   : > { %v1616_v8 = vpop.f32.mrf.mxu2  ;;  %v1281_v13 = vpop.f32.mrf.mxu0 }
 0x165   : > { %v1785_v9 = vpop.f32.mrf.mxu3  ;;  %v1617_v12 = vadd.f32 %v1616_v8, %v1448_v7  ;;  %v1450_v14 = vpop.f32.mrf.mxu1 }
 0x166   : > { %v1451_v18 = vadd.f32 %v1450_v14, %v1281_v13  ;;  %v2426_v13 = vld [vmem:[#allocation2 + $0x2a0] sm:$0xf]  ;;  %v2820_v14 = vld [vmem:[#allocation2 + $0x2ac] sm:$0xf0] }
 0x167   : > { %v1786_v17 = vadd.f32 %v1785_v9, %v1617_v12  ;;  %1320 = vmatmul.bf16.gmra.mxu0 %v2379_v10 }
 0x168   : > { %1489 = vmatmul.bf16.gmra.mxu1 %v2383_v11 }
 0x169   : > { %1917 = vst [vmem:[%s3290_s19 + $0x98] sm:$0xff] %v1786_v17  ;;  %1658 = vmatmul.bf16.gmra.mxu2 %v2387_v15  ;;  %v2818_v15 = vld [vmem:[#allocation2 + $0x2a4] sm:$0xf]  ;;  %v2434_v17 = vld [vmem:[#allocation2 + $0x2a8] sm:$0xf] }
 0x16a   : > { %1827 = vmatmul.bf16.gmra.mxu3 %v2391_v16  ;;  %v2428_v16 = vld [vmem:[#allocation2 + $0x2b0] sm:$0xf0] }
 0x16b   : > { %v2431_v25 = vor.u32 %v2818_v15, %v2428_v16 }
 0x16c   : > { %v1619_v19 = vpop.f32.mrf.mxu2  ;;  %v1283_v22 = vpop.f32.mrf.mxu0 }
 0x16d   : > { %v1788_v20 = vpop.f32.mrf.mxu3  ;;  %v1620_v21 = vadd.f32 %v1619_v19, %v1451_v18  ;;  %v1452_v23 = vpop.f32.mrf.mxu1  ;;  %v2821_v18 = vld [vmem:[#allocation2 + $0x2b4] sm:$0xf0]  ;;  %v2819_v19 = vld [vmem:[#allocation2 + $0x2ac] sm:$0xf] }
 0x16e   : > { %v1453_v33 = vadd.f32 %v1452_v23, %v1283_v22  ;;  %v2435_v29 = vor.u32 %v2821_v18, %v2434_v17 }
 0x16f   : > { %v1789_v24 = vadd.f32 %v1788_v20, %v1620_v21  ;;  %v2436_v20 = vld [vmem:[#allocation2 + $0x2b8] sm:$0xf0] }
 0x170   : > { %v2439_v30 = vor.u32 %v2819_v19, %v2436_v20 }
 0x171   : > { %1918 = vst [vmem:[%s3290_s19 + $0xa0] sm:$0xff] %v1789_v24  ;;  %v2427_v24 = vor.u32 %v2820_v14, %v2426_v13 }
 0x174   : > { %v1621_v34 = vpop.f32.mrf.mxu2  ;;  %v1286_v39 = vpop.f32.mrf.mxu0 }
 0x175   : > { %v1790_v35 = vpop.f32.mrf.mxu3  ;;  %v1622_v38 = vadd.f32 %v1621_v34, %v1453_v33  ;;  %v1455_v40 = vpop.f32.mrf.mxu1 }
 0x176   : > { %v1456_v44 = vadd.f32 %v1455_v40, %v1286_v39  ;;  %v2442_v39 = vld [vmem:[#allocation2 + $0x2c0] sm:$0xf]  ;;  %v2824_v40 = vld [vmem:[#allocation2 + $0x2cc] sm:$0xf0] }
 0x177   : > { %v1791_v43 = vadd.f32 %v1790_v35, %v1622_v38  ;;  %1325 = vmatmul.bf16.gmra.mxu0 %v2395_v36 }
 0x178   : > { %1494 = vmatmul.bf16.gmra.mxu1 %v2399_v37 }
 0x179   : > { %1919 = vst [vmem:[%s3290_s19 + $0xa8] sm:$0xff] %v1791_v43  ;;  %1663 = vmatmul.bf16.gmra.mxu2 %v2403_v41  ;;  %v2822_v41 = vld [vmem:[#allocation2 + $0x2c4] sm:$0xf]  ;;  %v2450_v43 = vld [vmem:[#allocation2 + $0x2c8] sm:$0xf] }
 0x17a   : > { %1832 = vmatmul.bf16.gmra.mxu3 %v2407_v42  ;;  %v2444_v42 = vld [vmem:[#allocation2 + $0x2d0] sm:$0xf0] }
 0x17b   : > { %v2447_v51 = vor.u32 %v2822_v41, %v2444_v42 }
 0x17c   : > { %v1624_v45 = vpop.f32.mrf.mxu2  ;;  %v1288_v48 = vpop.f32.mrf.mxu0 }
 0x17d   : > { %v1793_v46 = vpop.f32.mrf.mxu3  ;;  %v1625_v47 = vadd.f32 %v1624_v45, %v1456_v44  ;;  %v1457_v49 = vpop.f32.mrf.mxu1  ;;  %v2825_v44 = vld [vmem:[#allocation2 + $0x2d4] sm:$0xf0]  ;;  %v2823_v45 = vld [vmem:[#allocation2 + $0x2cc] sm:$0xf] }
 0x17e   : > { %v1458_v59 = vadd.f32 %v1457_v49, %v1288_v48  ;;  %v2451_v55 = vor.u32 %v2825_v44, %v2450_v43 }
 0x17f   : > { %v1794_v50 = vadd.f32 %v1793_v46, %v1625_v47  ;;  %v2452_v46 = vld [vmem:[#allocation2 + $0x2d8] sm:$0xf0] }
 0x180   : > { %v2455_v56 = vor.u32 %v2823_v45, %v2452_v46 }
 0x181   : > { %1920 = vst [vmem:[%s3290_s19 + $0xb0] sm:$0xff] %v1794_v50  ;;  %v2443_v50 = vor.u32 %v2824_v40, %v2442_v39 }
 0x184   : > { %v1626_v60 = vpop.f32.mrf.mxu2  ;;  %v1291_v1 = vpop.f32.mrf.mxu0 }
 0x185   : > { %v1795_v61 = vpop.f32.mrf.mxu3  ;;  %v1627_v0 = vadd.f32 %v1626_v60, %v1458_v59  ;;  %v1460_v2 = vpop.f32.mrf.mxu1 }
 0x186   : > { %v1461_v6 = vadd.f32 %v1460_v2, %v1291_v1  ;;  %v2458_v1 = vld [vmem:[#allocation2 + $0x2e0] sm:$0xf]  ;;  %v2828_v2 = vld [vmem:[#allocation2 + $0x2ec] sm:$0xf0] }
 0x187   : > { %v1796_v5 = vadd.f32 %v1795_v61, %v1627_v0  ;;  %1330 = vmatmul.bf16.gmra.mxu0 %v2411_v62 }
 0x188   : > { %1499 = vmatmul.bf16.gmra.mxu1 %v2415_v63 }
 0x189   : > { %1921 = vst [vmem:[%s3290_s19 + $0xb8] sm:$0xff] %v1796_v5  ;;  %1668 = vmatmul.bf16.gmra.mxu2 %v2419_v3  ;;  %v2826_v3 = vld [vmem:[#allocation2 + $0x2e4] sm:$0xf]  ;;  %v2466_v5 = vld [vmem:[#allocation2 + $0x2e8] sm:$0xf] }
 0x18a   : > { %1837 = vmatmul.bf16.gmra.mxu3 %v2423_v4  ;;  %v2460_v4 = vld [vmem:[#allocation2 + $0x2f0] sm:$0xf0] }
 0x18b   : > { %v2463_v13 = vor.u32 %v2826_v3, %v2460_v4 }
 0x18c   : > { %v1629_v7 = vpop.f32.mrf.mxu2  ;;  %v1293_v10 = vpop.f32.mrf.mxu0 }
 0x18d   : > { %v1798_v8 = vpop.f32.mrf.mxu3  ;;  %v1630_v9 = vadd.f32 %v1629_v7, %v1461_v6  ;;  %v1462_v11 = vpop.f32.mrf.mxu1  ;;  %v2829_v6 = vld [vmem:[#allocation2 + $0x2f4] sm:$0xf0]  ;;  %v2827_v7 = vld [vmem:[#allocation2 + $0x2ec] sm:$0xf] }
 0x18e   : > { %v1463_v21 = vadd.f32 %v1462_v11, %v1293_v10  ;;  %v2467_v17 = vor.u32 %v2829_v6, %v2466_v5 }
 0x18f   : > { %v1799_v12 = vadd.f32 %v1798_v8, %v1630_v9  ;;  %v2468_v8 = vld [vmem:[#allocation2 + $0x2f8] sm:$0xf0] }
 0x190   : > { %v2471_v18 = vor.u32 %v2827_v7, %v2468_v8 }
 0x191   : > { %1922 = vst [vmem:[%s3290_s19 + $0xc0] sm:$0xff] %v1799_v12  ;;  %v2459_v12 = vor.u32 %v2828_v2, %v2458_v1 }
 0x194   : > { %v1631_v22 = vpop.f32.mrf.mxu2  ;;  %v1296_v27 = vpop.f32.mrf.mxu0 }
 0x195   : > { %v1800_v23 = vpop.f32.mrf.mxu3  ;;  %v1632_v26 = vadd.f32 %v1631_v22, %v1463_v21  ;;  %v1465_v28 = vpop.f32.mrf.mxu1 }
 0x196   : > { %v1466_v32 = vadd.f32 %v1465_v28, %v1296_v27  ;;  %v2474_v27 = vld [vmem:[#allocation2 + $0x300] sm:$0xf]  ;;  %v2832_v28 = vld [vmem:[#allocation2 + $0x30c] sm:$0xf0] }
 0x197   : > { %v1801_v31 = vadd.f32 %v1800_v23, %v1632_v26  ;;  %1335 = vmatmul.bf16.gmra.mxu0 %v2427_v24 }
 0x198   : > { %1504 = vmatmul.bf16.gmra.mxu1 %v2431_v25 }
 0x199   : > { %1923 = vst [vmem:[%s3290_s19 + $0xc8] sm:$0xff] %v1801_v31  ;;  %1673 = vmatmul.bf16.gmra.mxu2 %v2435_v29  ;;  %v2830_v29 = vld [vmem:[#allocation2 + $0x304] sm:$0xf]  ;;  %v2482_v31 = vld [vmem:[#allocation2 + $0x308] sm:$0xf] }
 0x19a   : > { %1842 = vmatmul.bf16.gmra.mxu3 %v2439_v30  ;;  %v2476_v30 = vld [vmem:[#allocation2 + $0x310] sm:$0xf0] }
 0x19b   : > { %v2479_v39 = vor.u32 %v2830_v29, %v2476_v30 }
 0x19c   : > { %v1634_v33 = vpop.f32.mrf.mxu2  ;;  %v1298_v36 = vpop.f32.mrf.mxu0 }
 0x19d   : > { %v1803_v34 = vpop.f32.mrf.mxu3  ;;  %v1635_v35 = vadd.f32 %v1634_v33, %v1466_v32  ;;  %v1467_v37 = vpop.f32.mrf.mxu1  ;;  %v2833_v32 = vld [vmem:[#allocation2 + $0x314] sm:$0xf0]  ;;  %v2831_v33 = vld [vmem:[#allocation2 + $0x30c] sm:$0xf] }
 0x19e   : > { %v1468_v47 = vadd.f32 %v1467_v37, %v1298_v36  ;;  %v2483_v43 = vor.u32 %v2833_v32, %v2482_v31 }
 0x19f   : > { %v1804_v38 = vadd.f32 %v1803_v34, %v1635_v35  ;;  %v2484_v34 = vld [vmem:[#allocation2 + $0x318] sm:$0xf0] }
 0x1a0   : > { %v2487_v44 = vor.u32 %v2831_v33, %v2484_v34 }
 0x1a1   : > { %1924 = vst [vmem:[%s3290_s19 + $0xd0] sm:$0xff] %v1804_v38  ;;  %v2475_v38 = vor.u32 %v2832_v28, %v2474_v27 }
 0x1a4   : > { %v1636_v48 = vpop.f32.mrf.mxu2  ;;  %v1301_v53 = vpop.f32.mrf.mxu0 }
 0x1a5   : > { %v1805_v49 = vpop.f32.mrf.mxu3  ;;  %v1637_v52 = vadd.f32 %v1636_v48, %v1468_v47  ;;  %v1470_v54 = vpop.f32.mrf.mxu1 }
 0x1a6   : > { %v1471_v58 = vadd.f32 %v1470_v54, %v1301_v53  ;;  %v2490_v53 = vld [vmem:[#allocation2 + $0x320] sm:$0xf]  ;;  %v2836_v54 = vld [vmem:[#allocation2 + $0x32c] sm:$0xf0] }
 0x1a7   : > { %v1806_v57 = vadd.f32 %v1805_v49, %v1637_v52  ;;  %1340 = vmatmul.bf16.gmra.mxu0 %v2443_v50 }
 0x1a8   : > { %1509 = vmatmul.bf16.gmra.mxu1 %v2447_v51 }
 0x1a9   : > { %1925 = vst [vmem:[%s3290_s19 + $0xd8] sm:$0xff] %v1806_v57  ;;  %1678 = vmatmul.bf16.gmra.mxu2 %v2451_v55  ;;  %v2834_v55 = vld [vmem:[#allocation2 + $0x324] sm:$0xf]  ;;  %v2498_v57 = vld [vmem:[#allocation2 + $0x328] sm:$0xf] }
 0x1aa   : > { %1847 = vmatmul.bf16.gmra.mxu3 %v2455_v56  ;;  %v2492_v56 = vld [vmem:[#allocation2 + $0x330] sm:$0xf0] }
 0x1ab   : > { %v2495_v1 = vor.u32 %v2834_v55, %v2492_v56 }
 0x1ac   : > { %v1639_v59 = vpop.f32.mrf.mxu2  ;;  %v1303_v62 = vpop.f32.mrf.mxu0 }
 0x1ad   : > { %v1808_v60 = vpop.f32.mrf.mxu3  ;;  %v1640_v61 = vadd.f32 %v1639_v59, %v1471_v58  ;;  %v1472_v63 = vpop.f32.mrf.mxu1  ;;  %v2837_v58 = vld [vmem:[#allocation2 + $0x334] sm:$0xf0]  ;;  %v2835_v59 = vld [vmem:[#allocation2 + $0x32c] sm:$0xf] }
 0x1ae   : > { %v1473_v9 = vadd.f32 %v1472_v63, %v1303_v62  ;;  %v2499_v5 = vor.u32 %v2837_v58, %v2498_v57 }
 0x1af   : > { %v1809_v0 = vadd.f32 %v1808_v60, %v1640_v61  ;;  %v2500_v60 = vld [vmem:[#allocation2 + $0x338] sm:$0xf0] }
 0x1b0   : > { %v2503_v6 = vor.u32 %v2835_v59, %v2500_v60 }
 0x1b1   : > { %1926 = vst [vmem:[%s3290_s19 + $0xe0] sm:$0xff] %v1809_v0  ;;  %v2491_v0 = vor.u32 %v2836_v54, %v2490_v53 }
 0x1b4   : > { %v1641_v10 = vpop.f32.mrf.mxu2  ;;  %v1306_v15 = vpop.f32.mrf.mxu0 }
 0x1b5   : > { %v1810_v11 = vpop.f32.mrf.mxu3  ;;  %v1642_v14 = vadd.f32 %v1641_v10, %v1473_v9  ;;  %v1475_v16 = vpop.f32.mrf.mxu1 }
 0x1b6   : > { %v1476_v20 = vadd.f32 %v1475_v16, %v1306_v15  ;;  %v2506_v15 = vld [vmem:[#allocation2 + $0x340] sm:$0xf]  ;;  %v2840_v16 = vld [vmem:[#allocation2 + $0x34c] sm:$0xf0] }
 0x1b7   : > { %v1811_v19 = vadd.f32 %v1810_v11, %v1642_v14  ;;  %1345 = vmatmul.bf16.gmra.mxu0 %v2459_v12 }
 0x1b8   : > { %1514 = vmatmul.bf16.gmra.mxu1 %v2463_v13 }
 0x1b9   : > { %1927 = vst [vmem:[%s3290_s19 + $0xe8] sm:$0xff] %v1811_v19  ;;  %1683 = vmatmul.bf16.gmra.mxu2 %v2467_v17  ;;  %v2838_v17 = vld [vmem:[#allocation2 + $0x344] sm:$0xf]  ;;  %v2514_v19 = vld [vmem:[#allocation2 + $0x348] sm:$0xf] }
 0x1ba   : > { %1852 = vmatmul.bf16.gmra.mxu3 %v2471_v18  ;;  %v2508_v18 = vld [vmem:[#allocation2 + $0x350] sm:$0xf0] }
 0x1bb   : > { %v2511_v27 = vor.u32 %v2838_v17, %v2508_v18 }
 0x1bc   : > { %v1644_v21 = vpop.f32.mrf.mxu2  ;;  %v1308_v24 = vpop.f32.mrf.mxu0 }
 0x1bd   : > { %v1813_v22 = vpop.f32.mrf.mxu3  ;;  %v1645_v23 = vadd.f32 %v1644_v21, %v1476_v20  ;;  %v1477_v25 = vpop.f32.mrf.mxu1  ;;  %v2841_v20 = vld [vmem:[#allocation2 + $0x354] sm:$0xf0]  ;;  %v2839_v21 = vld [vmem:[#allocation2 + $0x34c] sm:$0xf] }
 0x1be   : > { %v1478_v35 = vadd.f32 %v1477_v25, %v1308_v24  ;;  %v2515_v31 = vor.u32 %v2841_v20, %v2514_v19 }
 0x1bf   : > { %v1814_v26 = vadd.f32 %v1813_v22, %v1645_v23  ;;  %v2516_v22 = vld [vmem:[#allocation2 + $0x358] sm:$0xf0] }
 0x1c0   : > { %v2519_v32 = vor.u32 %v2839_v21, %v2516_v22 }
 0x1c1   : > { %1928 = vst [vmem:[%s3290_s19 + $0xf0] sm:$0xff] %v1814_v26  ;;  %v2507_v26 = vor.u32 %v2840_v16, %v2506_v15 }
 0x1c4   : > { %v1646_v36 = vpop.f32.mrf.mxu2  ;;  %v1311_v41 = vpop.f32.mrf.mxu0 }
 0x1c5   : > { %v1815_v37 = vpop.f32.mrf.mxu3  ;;  %v1647_v40 = vadd.f32 %v1646_v36, %v1478_v35  ;;  %v1480_v42 = vpop.f32.mrf.mxu1 }
 0x1c6   : > { %v1481_v46 = vadd.f32 %v1480_v42, %v1311_v41  ;;  %v2522_v41 = vld [vmem:[#allocation2 + $0x360] sm:$0xf]  ;;  %v2844_v42 = vld [vmem:[#allocation2 + $0x36c] sm:$0xf0] }
 0x1c7   : > { %v1816_v45 = vadd.f32 %v1815_v37, %v1647_v40  ;;  %1350 = vmatmul.bf16.gmra.mxu0 %v2475_v38 }
 0x1c8   : > { %1519 = vmatmul.bf16.gmra.mxu1 %v2479_v39 }
 0x1c9   : > { %1929 = vst [vmem:[%s3290_s19 + $0xf8] sm:$0xff] %v1816_v45  ;;  %1688 = vmatmul.bf16.gmra.mxu2 %v2483_v43  ;;  %v2842_v43 = vld [vmem:[#allocation2 + $0x364] sm:$0xf]  ;;  %v2530_v45 = vld [vmem:[#allocation2 + $0x368] sm:$0xf] }
 0x1ca   : > { %1857 = vmatmul.bf16.gmra.mxu3 %v2487_v44  ;;  %v2524_v44 = vld [vmem:[#allocation2 + $0x370] sm:$0xf0] }
 0x1cb   : > { %v2527_v53 = vor.u32 %v2842_v43, %v2524_v44 }
 0x1cc   : > { %v1649_v47 = vpop.f32.mrf.mxu2  ;;  %v1313_v50 = vpop.f32.mrf.mxu0 }
 0x1cd   : > { %v1818_v48 = vpop.f32.mrf.mxu3  ;;  %v1650_v49 = vadd.f32 %v1649_v47, %v1481_v46  ;;  %v1482_v51 = vpop.f32.mrf.mxu1  ;;  %v2845_v46 = vld [vmem:[#allocation2 + $0x374] sm:$0xf0]  ;;  %v2843_v47 = vld [vmem:[#allocation2 + $0x36c] sm:$0xf] }
 0x1ce   : > { %v1483_v61 = vadd.f32 %v1482_v51, %v1313_v50  ;;  %v2531_v57 = vor.u32 %v2845_v46, %v2530_v45 }
 0x1cf   : > { %v1819_v52 = vadd.f32 %v1818_v48, %v1650_v49  ;;  %v2532_v48 = vld [vmem:[#allocation2 + $0x378] sm:$0xf0] }
 0x1d0   : > { %v2535_v58 = vor.u32 %v2843_v47, %v2532_v48 }
 0x1d1   : > { %1930 = vst [vmem:[%s3290_s19 + $0x100] sm:$0xff] %v1819_v52  ;;  %v2523_v52 = vor.u32 %v2844_v42, %v2522_v41 }
 0x1d4   : > { %v1651_v62 = vpop.f32.mrf.mxu2  ;;  %v1316_v3 = vpop.f32.mrf.mxu0 }
 0x1d5   : > { %v1820_v63 = vpop.f32.mrf.mxu3  ;;  %v1652_v2 = vadd.f32 %v1651_v62, %v1483_v61  ;;  %v1485_v4 = vpop.f32.mrf.mxu1 }
 0x1d6   : > { %v1486_v8 = vadd.f32 %v1485_v4, %v1316_v3  ;;  %v2538_v3 = vld [vmem:[#allocation2 + $0x380] sm:$0xf]  ;;  %v2848_v4 = vld [vmem:[#allocation2 + $0x38c] sm:$0xf0] }
 0x1d7   : > { %v1821_v7 = vadd.f32 %v1820_v63, %v1652_v2  ;;  %1355 = vmatmul.bf16.gmra.mxu0 %v2491_v0 }
 0x1d8   : > { %1524 = vmatmul.bf16.gmra.mxu1 %v2495_v1 }
 0x1d9   : > { %1931 = vst [vmem:[%s3290_s19 + $0x108] sm:$0xff] %v1821_v7  ;;  %1693 = vmatmul.bf16.gmra.mxu2 %v2499_v5  ;;  %v2846_v5 = vld [vmem:[#allocation2 + $0x384] sm:$0xf]  ;;  %v2546_v7 = vld [vmem:[#allocation2 + $0x388] sm:$0xf] }
 0x1da   : > { %1862 = vmatmul.bf16.gmra.mxu3 %v2503_v6  ;;  %v2540_v6 = vld [vmem:[#allocation2 + $0x390] sm:$0xf0] }
 0x1db   : > { %v2543_v15 = vor.u32 %v2846_v5, %v2540_v6 }
 0x1dc   : > { %v1654_v9 = vpop.f32.mrf.mxu2  ;;  %v1318_v12 = vpop.f32.mrf.mxu0 }
 0x1dd   : > { %v1823_v10 = vpop.f32.mrf.mxu3  ;;  %v1655_v11 = vadd.f32 %v1654_v9, %v1486_v8  ;;  %v1487_v13 = vpop.f32.mrf.mxu1  ;;  %v2849_v8 = vld [vmem:[#allocation2 + $0x394] sm:$0xf0]  ;;  %v2847_v9 = vld [vmem:[#allocation2 + $0x38c] sm:$0xf] }
 0x1de   : > { %v1488_v23 = vadd.f32 %v1487_v13, %v1318_v12  ;;  %v2547_v19 = vor.u32 %v2849_v8, %v2546_v7 }
 0x1df   : > { %v1824_v14 = vadd.f32 %v1823_v10, %v1655_v11  ;;  %v2548_v10 = vld [vmem:[#allocation2 + $0x398] sm:$0xf0] }
 0x1e0   : > { %v2551_v20 = vor.u32 %v2847_v9, %v2548_v10 }
 0x1e1   : > { %1932 = vst [vmem:[%s3290_s19 + $0x110] sm:$0xff] %v1824_v14  ;;  %v2539_v14 = vor.u32 %v2848_v4, %v2538_v3 }
 0x1e4   : > { %v1656_v24 = vpop.f32.mrf.mxu2  ;;  %v1321_v29 = vpop.f32.mrf.mxu0 }
 0x1e5   : > { %v1825_v25 = vpop.f32.mrf.mxu3  ;;  %v1657_v28 = vadd.f32 %v1656_v24, %v1488_v23  ;;  %v1490_v30 = vpop.f32.mrf.mxu1 }
 0x1e6   : > { %v1491_v34 = vadd.f32 %v1490_v30, %v1321_v29  ;;  %v2554_v29 = vld [vmem:[#allocation2 + $0x3a0] sm:$0xf]  ;;  %v2852_v30 = vld [vmem:[#allocation2 + $0x3ac] sm:$0xf0] }
 0x1e7   : > { %v1826_v33 = vadd.f32 %v1825_v25, %v1657_v28  ;;  %1360 = vmatmul.bf16.gmra.mxu0 %v2507_v26 }
 0x1e8   : > { %1529 = vmatmul.bf16.gmra.mxu1 %v2511_v27 }
 0x1e9   : > { %1933 = vst [vmem:[%s3290_s19 + $0x118] sm:$0xff] %v1826_v33  ;;  %1698 = vmatmul.bf16.gmra.mxu2 %v2515_v31  ;;  %v2850_v31 = vld [vmem:[#allocation2 + $0x3a4] sm:$0xf]  ;;  %v2562_v33 = vld [vmem:[#allocation2 + $0x3a8] sm:$0xf] }
 0x1ea   : > { %1867 = vmatmul.bf16.gmra.mxu3 %v2519_v32  ;;  %v2556_v32 = vld [vmem:[#allocation2 + $0x3b0] sm:$0xf0] }
 0x1eb   : > { %v2559_v41 = vor.u32 %v2850_v31, %v2556_v32 }
 0x1ec   : > { %v1659_v35 = vpop.f32.mrf.mxu2  ;;  %v1323_v38 = vpop.f32.mrf.mxu0 }
 0x1ed   : > { %v1828_v36 = vpop.f32.mrf.mxu3  ;;  %v1660_v37 = vadd.f32 %v1659_v35, %v1491_v34  ;;  %v1492_v39 = vpop.f32.mrf.mxu1  ;;  %v2853_v34 = vld [vmem:[#allocation2 + $0x3b4] sm:$0xf0]  ;;  %v2851_v35 = vld [vmem:[#allocation2 + $0x3ac] sm:$0xf] }
 0x1ee   : > { %v1493_v49 = vadd.f32 %v1492_v39, %v1323_v38  ;;  %v2563_v45 = vor.u32 %v2853_v34, %v2562_v33 }
 0x1ef   : > { %v1829_v40 = vadd.f32 %v1828_v36, %v1660_v37  ;;  %v2564_v36 = vld [vmem:[#allocation2 + $0x3b8] sm:$0xf0] }
 0x1f0   : > { %v2567_v46 = vor.u32 %v2851_v35, %v2564_v36 }
 0x1f1   : > { %1934 = vst [vmem:[%s3290_s19 + $0x120] sm:$0xff] %v1829_v40  ;;  %v2555_v40 = vor.u32 %v2852_v30, %v2554_v29 }
 0x1f4   : > { %v1661_v50 = vpop.f32.mrf.mxu2  ;;  %v1326_v55 = vpop.f32.mrf.mxu0 }
 0x1f5   : > { %v1830_v51 = vpop.f32.mrf.mxu3  ;;  %v1662_v54 = vadd.f32 %v1661_v50, %v1493_v49  ;;  %v1495_v56 = vpop.f32.mrf.mxu1 }
 0x1f6   : > { %v1496_v60 = vadd.f32 %v1495_v56, %v1326_v55  ;;  %v2570_v55 = vld [vmem:[#allocation2 + $0x3c0] sm:$0xf]  ;;  %v2856_v56 = vld [vmem:[#allocation2 + $0x3cc] sm:$0xf0] }
 0x1f7   : > { %v1831_v59 = vadd.f32 %v1830_v51, %v1662_v54  ;;  %1365 = vmatmul.bf16.gmra.mxu0 %v2523_v52 }
 0x1f8   : > { %1534 = vmatmul.bf16.gmra.mxu1 %v2527_v53 }
 0x1f9   : > { %1935 = vst [vmem:[%s3290_s19 + $0x128] sm:$0xff] %v1831_v59  ;;  %1703 = vmatmul.bf16.gmra.mxu2 %v2531_v57  ;;  %v2854_v57 = vld [vmem:[#allocation2 + $0x3c4] sm:$0xf]  ;;  %v2578_v59 = vld [vmem:[#allocation2 + $0x3c8] sm:$0xf] }
 0x1fa   : > { %1872 = vmatmul.bf16.gmra.mxu3 %v2535_v58  ;;  %v2572_v58 = vld [vmem:[#allocation2 + $0x3d0] sm:$0xf0] }
 0x1fb   : > { %v2575_v3 = vor.u32 %v2854_v57, %v2572_v58 }
 0x1fc   : > { %v1664_v61 = vpop.f32.mrf.mxu2  ;;  %v1328_v0 = vpop.f32.mrf.mxu0 }
 0x1fd   : > { %v1833_v62 = vpop.f32.mrf.mxu3  ;;  %v1665_v63 = vadd.f32 %v1664_v61, %v1496_v60  ;;  %v1497_v1 = vpop.f32.mrf.mxu1  ;;  %v2857_v60 = vld [vmem:[#allocation2 + $0x3d4] sm:$0xf0]  ;;  %v2855_v61 = vld [vmem:[#allocation2 + $0x3cc] sm:$0xf] }
 0x1fe   : > { %v1498_v11 = vadd.f32 %v1497_v1, %v1328_v0  ;;  %v2579_v7 = vor.u32 %v2857_v60, %v2578_v59 }
 0x1ff   : > { %v1834_v2 = vadd.f32 %v1833_v62, %v1665_v63  ;;  %v2580_v62 = vld [vmem:[#allocation2 + $0x3d8] sm:$0xf0] }
 0x200   : > { %v2583_v8 = vor.u32 %v2855_v61, %v2580_v62 }
 0x201   : > { %1936 = vst [vmem:[%s3290_s19 + $0x130] sm:$0xff] %v1834_v2  ;;  %v2571_v2 = vor.u32 %v2856_v56, %v2570_v55 }
 0x204   : > { %v1666_v12 = vpop.f32.mrf.mxu2  ;;  %v1331_v17 = vpop.f32.mrf.mxu0 }
 0x205   : > { %v1835_v13 = vpop.f32.mrf.mxu3  ;;  %v1667_v16 = vadd.f32 %v1666_v12, %v1498_v11  ;;  %v1500_v18 = vpop.f32.mrf.mxu1 }
 0x206   : > { %v1501_v22 = vadd.f32 %v1500_v18, %v1331_v17  ;;  %v2586_v17 = vld [vmem:[#allocation2 + $0x3e0] sm:$0xf]  ;;  %v2860_v18 = vld [vmem:[#allocation2 + $0x3ec] sm:$0xf0] }
 0x207   : > { %v1836_v21 = vadd.f32 %v1835_v13, %v1667_v16  ;;  %1370 = vmatmul.bf16.gmra.mxu0 %v2539_v14 }
 0x208   : > { %1539 = vmatmul.bf16.gmra.mxu1 %v2543_v15 }
 0x209   : > { %1937 = vst [vmem:[%s3290_s19 + $0x138] sm:$0xff] %v1836_v21  ;;  %1708 = vmatmul.bf16.gmra.mxu2 %v2547_v19  ;;  %v2858_v19 = vld [vmem:[#allocation2 + $0x3e4] sm:$0xf]  ;;  %v2594_v21 = vld [vmem:[#allocation2 + $0x3e8] sm:$0xf] }
 0x20a   : > { %1877 = vmatmul.bf16.gmra.mxu3 %v2551_v20  ;;  %v2588_v20 = vld [vmem:[#allocation2 + $0x3f0] sm:$0xf0] }
 0x20b   : > { %v2591_v29 = vor.u32 %v2858_v19, %v2588_v20 }
 0x20c   : > { %v1669_v23 = vpop.f32.mrf.mxu2  ;;  %v1333_v26 = vpop.f32.mrf.mxu0 }
 0x20d   : > { %v1838_v24 = vpop.f32.mrf.mxu3  ;;  %v1670_v25 = vadd.f32 %v1669_v23, %v1501_v22  ;;  %v1502_v27 = vpop.f32.mrf.mxu1  ;;  %v2861_v22 = vld [vmem:[#allocation2 + $0x3f4] sm:$0xf0]  ;;  %v2859_v23 = vld [vmem:[#allocation2 + $0x3ec] sm:$0xf] }
 0x20e   : > { %v1503_v37 = vadd.f32 %v1502_v27, %v1333_v26  ;;  %v2595_v33 = vor.u32 %v2861_v22, %v2594_v21 }
 0x20f   : > { %v1839_v28 = vadd.f32 %v1838_v24, %v1670_v25  ;;  %v2596_v24 = vld [vmem:[#allocation2 + $0x3f8] sm:$0xf0] }
 0x210   : > { %v2599_v34 = vor.u32 %v2859_v23, %v2596_v24 }
 0x211   : > { %1938 = vst [vmem:[%s3290_s19 + $0x140] sm:$0xff] %v1839_v28  ;;  %v2587_v28 = vor.u32 %v2860_v18, %v2586_v17 }
 0x214   : > { %v1671_v38 = vpop.f32.mrf.mxu2  ;;  %v1336_v43 = vpop.f32.mrf.mxu0 }
 0x215   : > { %v1840_v39 = vpop.f32.mrf.mxu3  ;;  %v1672_v42 = vadd.f32 %v1671_v38, %v1503_v37  ;;  %v1505_v44 = vpop.f32.mrf.mxu1 }
 0x216   : > { %v1506_v48 = vadd.f32 %v1505_v44, %v1336_v43 }
 0x217   : > { %v1841_v47 = vadd.f32 %v1840_v39, %v1672_v42  ;;  %1375 = vmatmul.bf16.gmra.mxu0 %v2555_v40 }
 0x218   : > { %1544 = vmatmul.bf16.gmra.mxu1 %v2559_v41 }
 0x219   : > { %1939 = vst [vmem:[%s3290_s19 + $0x148] sm:$0xff] %v1841_v47  ;;  %1713 = vmatmul.bf16.gmra.mxu2 %v2563_v45 }
 0x21a   : > { %1882 = vmatmul.bf16.gmra.mxu3 %v2567_v46 }
 0x21c   : > { %v1674_v49 = vpop.f32.mrf.mxu2  ;;  %v1338_v52 = vpop.f32.mrf.mxu0 }
 0x21d   : > { %v1843_v50 = vpop.f32.mrf.mxu3  ;;  %v1675_v51 = vadd.f32 %v1674_v49, %v1506_v48  ;;  %v1507_v53 = vpop.f32.mrf.mxu1 }
 0x21e   : > { %v1508_v63 = vadd.f32 %v1507_v53, %v1338_v52 }
 0x21f   : > { %v1844_v54 = vadd.f32 %v1843_v50, %v1675_v51 }
 0x221   : > { %1940 = vst [vmem:[%s3290_s19 + $0x150] sm:$0xff] %v1844_v54 }
 0x224   : > { %v1676_v0 = vpop.f32.mrf.mxu2  ;;  %v1341_v5 = vpop.f32.mrf.mxu0 }
 0x225   : > { %v1845_v1 = vpop.f32.mrf.mxu3  ;;  %v1677_v4 = vadd.f32 %v1676_v0, %v1508_v63  ;;  %v1510_v6 = vpop.f32.mrf.mxu1 }
 0x226   : > { %v1511_v10 = vadd.f32 %v1510_v6, %v1341_v5 }
 0x227   : > { %v1846_v9 = vadd.f32 %v1845_v1, %v1677_v4  ;;  %1380 = vmatmul.bf16.gmra.mxu0 %v2571_v2 }
 0x228   : > { %1549 = vmatmul.bf16.gmra.mxu1 %v2575_v3 }
 0x229   : > { %1941 = vst [vmem:[%s3290_s19 + $0x158] sm:$0xff] %v1846_v9  ;;  %1718 = vmatmul.bf16.gmra.mxu2 %v2579_v7 }
 0x22a   : > { %1887 = vmatmul.bf16.gmra.mxu3 %v2583_v8 }
 0x22c   : > { %v1679_v11 = vpop.f32.mrf.mxu2  ;;  %v1343_v14 = vpop.f32.mrf.mxu0 }
 0x22d   : > { %v1848_v12 = vpop.f32.mrf.mxu3  ;;  %v1680_v13 = vadd.f32 %v1679_v11, %v1511_v10  ;;  %v1512_v15 = vpop.f32.mrf.mxu1 }
 0x22e   : > { %v1513_v25 = vadd.f32 %v1512_v15, %v1343_v14 }
 0x22f   : > { %v1849_v16 = vadd.f32 %v1848_v12, %v1680_v13 }
 0x231   : > { %1942 = vst [vmem:[%s3290_s19 + $0x160] sm:$0xff] %v1849_v16 }
 0x234   : > { %v1681_v26 = vpop.f32.mrf.mxu2  ;;  %v1346_v31 = vpop.f32.mrf.mxu0 }
 0x235   : > { %v1850_v27 = vpop.f32.mrf.mxu3  ;;  %v1682_v30 = vadd.f32 %v1681_v26, %v1513_v25  ;;  %v1515_v32 = vpop.f32.mrf.mxu1 }
 0x236   : > { %v1516_v36 = vadd.f32 %v1515_v32, %v1346_v31 }
 0x237   : > { %v1851_v35 = vadd.f32 %v1850_v27, %v1682_v30  ;;  %1385 = vmatmul.bf16.gmra.mxu0 %v2587_v28 }
 0x238   : > { %1554 = vmatmul.bf16.gmra.mxu1 %v2591_v29 }
 0x239   : > { %1943 = vst [vmem:[%s3290_s19 + $0x168] sm:$0xff] %v1851_v35  ;;  %1723 = vmatmul.bf16.gmra.mxu2 %v2595_v33 }
 0x23a   : > { %1892 = vmatmul.bf16.gmra.mxu3 %v2599_v34 }
 0x23c   : > { %v1684_v37 = vpop.f32.mrf.mxu2  ;;  %v1348_v40 = vpop.f32.mrf.mxu0 }
 0x23d   : > { %v1853_v38 = vpop.f32.mrf.mxu3  ;;  %v1685_v39 = vadd.f32 %v1684_v37, %v1516_v36  ;;  %v1517_v41 = vpop.f32.mrf.mxu1 }
 0x23e   : > { %v1518_v43 = vadd.f32 %v1517_v41, %v1348_v40 }
 0x23f   : > { %v1854_v42 = vadd.f32 %v1853_v38, %v1685_v39 }
 0x241   : > { %1944 = vst [vmem:[%s3290_s19 + $0x170] sm:$0xff] %v1854_v42 }
 0x244   : > { %v1686_v44 = vpop.f32.mrf.mxu2  ;;  %v1351_v47 = vpop.f32.mrf.mxu0 }
 0x245   : > { %v1855_v45 = vpop.f32.mrf.mxu3  ;;  %v1687_v46 = vadd.f32 %v1686_v44, %v1518_v43  ;;  %v1520_v48 = vpop.f32.mrf.mxu1 }
 0x246   : > { %v1521_v50 = vadd.f32 %v1520_v48, %v1351_v47 }
 0x247   : > { %v1856_v49 = vadd.f32 %v1855_v45, %v1687_v46 }
 0x249   : > { %1945 = vst [vmem:[%s3290_s19 + $0x178] sm:$0xff] %v1856_v49 }
 0x24c   : > { %v1689_v51 = vpop.f32.mrf.mxu2  ;;  %v1353_v54 = vpop.f32.mrf.mxu0 }
 0x24d   : > { %v1858_v52 = vpop.f32.mrf.mxu3  ;;  %v1690_v53 = vadd.f32 %v1689_v51, %v1521_v50  ;;  %v1522_v55 = vpop.f32.mrf.mxu1 }
 0x24e   : > { %v1523_v57 = vadd.f32 %v1522_v55, %v1353_v54 }
 0x24f   : > { %v1859_v56 = vadd.f32 %v1858_v52, %v1690_v53 }
 0x251   : > { %1946 = vst [vmem:[%s3290_s19 + $0x180] sm:$0xff] %v1859_v56 }
 0x254   : > { %v1691_v58 = vpop.f32.mrf.mxu2  ;;  %v1356_v61 = vpop.f32.mrf.mxu0 }
 0x255   : > { %v1860_v59 = vpop.f32.mrf.mxu3  ;;  %v1692_v60 = vadd.f32 %v1691_v58, %v1523_v57  ;;  %v1525_v62 = vpop.f32.mrf.mxu1 }
 0x256   : > { %v1526_v0 = vadd.f32 %v1525_v62, %v1356_v61 }
 0x257   : > { %v1861_v63 = vadd.f32 %v1860_v59, %v1692_v60 }
 0x259   : > { %1947 = vst [vmem:[%s3290_s19 + $0x188] sm:$0xff] %v1861_v63 }
 0x25c   : > { %v1694_v1 = vpop.f32.mrf.mxu2  ;;  %v1358_v4 = vpop.f32.mrf.mxu0 }
 0x25d   : > { %v1863_v2 = vpop.f32.mrf.mxu3  ;;  %v1695_v3 = vadd.f32 %v1694_v1, %v1526_v0  ;;  %v1527_v5 = vpop.f32.mrf.mxu1 }
 0x25e   : > { %v1528_v7 = vadd.f32 %v1527_v5, %v1358_v4 }
 0x25f   : > { %v1864_v6 = vadd.f32 %v1863_v2, %v1695_v3 }
 0x261   : > { %1948 = vst [vmem:[%s3290_s19 + $0x190] sm:$0xff] %v1864_v6 }
 0x264   : > { %v1696_v8 = vpop.f32.mrf.mxu2  ;;  %v1361_v11 = vpop.f32.mrf.mxu0 }
 0x265   : > { %v1865_v9 = vpop.f32.mrf.mxu3  ;;  %v1697_v10 = vadd.f32 %v1696_v8, %v1528_v7  ;;  %v1530_v12 = vpop.f32.mrf.mxu1 }
 0x266   : > { %v1531_v14 = vadd.f32 %v1530_v12, %v1361_v11 }
 0x267   : > { %v1866_v13 = vadd.f32 %v1865_v9, %v1697_v10 }
 0x269   : > { %1949 = vst [vmem:[%s3290_s19 + $0x198] sm:$0xff] %v1866_v13 }
 0x26c   : > { %v1699_v15 = vpop.f32.mrf.mxu2  ;;  %v1363_v18 = vpop.f32.mrf.mxu0 }
 0x26d   : > { %v1868_v16 = vpop.f32.mrf.mxu3  ;;  %v1700_v17 = vadd.f32 %v1699_v15, %v1531_v14  ;;  %v1532_v19 = vpop.f32.mrf.mxu1 }
 0x26e   : > { %v1533_v21 = vadd.f32 %v1532_v19, %v1363_v18 }
 0x26f   : > { %v1869_v20 = vadd.f32 %v1868_v16, %v1700_v17 }
 0x271   : > { %1950 = vst [vmem:[%s3290_s19 + $0x1a0] sm:$0xff] %v1869_v20 }
 0x274   : > { %v1701_v22 = vpop.f32.mrf.mxu2  ;;  %v1366_v25 = vpop.f32.mrf.mxu0 }
 0x275   : > { %v1870_v23 = vpop.f32.mrf.mxu3  ;;  %v1702_v24 = vadd.f32 %v1701_v22, %v1533_v21  ;;  %v1535_v26 = vpop.f32.mrf.mxu1 }
 0x276   : > { %v1536_v28 = vadd.f32 %v1535_v26, %v1366_v25 }
 0x277   : > { %v1871_v27 = vadd.f32 %v1870_v23, %v1702_v24 }
 0x279   : > { %1951 = vst [vmem:[%s3290_s19 + $0x1a8] sm:$0xff] %v1871_v27 }
 0x27c   : > { %v1704_v29 = vpop.f32.mrf.mxu2  ;;  %v1368_v32 = vpop.f32.mrf.mxu0 }
 0x27d   : > { %v1873_v30 = vpop.f32.mrf.mxu3  ;;  %v1705_v31 = vadd.f32 %v1704_v29, %v1536_v28  ;;  %v1537_v33 = vpop.f32.mrf.mxu1 }
 0x27e   : > { %v1538_v35 = vadd.f32 %v1537_v33, %v1368_v32 }
 0x27f   : > { %v1874_v34 = vadd.f32 %v1873_v30, %v1705_v31 }
 0x281   : > { %1952 = vst [vmem:[%s3290_s19 + $0x1b0] sm:$0xff] %v1874_v34 }
 0x284   : > { %v1706_v36 = vpop.f32.mrf.mxu2  ;;  %v1371_v39 = vpop.f32.mrf.mxu0 }
 0x285   : > { %v1875_v37 = vpop.f32.mrf.mxu3  ;;  %v1707_v38 = vadd.f32 %v1706_v36, %v1538_v35  ;;  %v1540_v40 = vpop.f32.mrf.mxu1 }
 0x286   : > { %v1541_v42 = vadd.f32 %v1540_v40, %v1371_v39 }
 0x287   : > { %v1876_v41 = vadd.f32 %v1875_v37, %v1707_v38 }
 0x289   : > { %1953 = vst [vmem:[%s3290_s19 + $0x1b8] sm:$0xff] %v1876_v41 }
 0x28c   : > { %v1709_v43 = vpop.f32.mrf.mxu2  ;;  %v1373_v46 = vpop.f32.mrf.mxu0 }
 0x28d   : > { %v1878_v44 = vpop.f32.mrf.mxu3  ;;  %v1710_v45 = vadd.f32 %v1709_v43, %v1541_v42  ;;  %v1542_v47 = vpop.f32.mrf.mxu1 }
 0x28e   : > { %v1543_v49 = vadd.f32 %v1542_v47, %v1373_v46 }
 0x28f   : > { %v1879_v48 = vadd.f32 %v1878_v44, %v1710_v45 }
 0x291   : > { %1954 = vst [vmem:[%s3290_s19 + $0x1c0] sm:$0xff] %v1879_v48 }
 0x294   : > { %v1711_v50 = vpop.f32.mrf.mxu2  ;;  %v1376_v53 = vpop.f32.mrf.mxu0 }
 0x295   : > { %v1880_v51 = vpop.f32.mrf.mxu3  ;;  %v1712_v52 = vadd.f32 %v1711_v50, %v1543_v49  ;;  %v1545_v54 = vpop.f32.mrf.mxu1 }
 0x296   : > { %v1546_v56 = vadd.f32 %v1545_v54, %v1376_v53 }
 0x297   : > { %v1881_v55 = vadd.f32 %v1880_v51, %v1712_v52 }
 0x299   : > { %1955 = vst [vmem:[%s3290_s19 + $0x1c8] sm:$0xff] %v1881_v55 }
 0x29c   : > { %v1714_v57 = vpop.f32.mrf.mxu2  ;;  %v1378_v60 = vpop.f32.mrf.mxu0 }
 0x29d   : > { %v1883_v58 = vpop.f32.mrf.mxu3  ;;  %v1715_v59 = vadd.f32 %v1714_v57, %v1546_v56  ;;  %v1547_v61 = vpop.f32.mrf.mxu1 }
 0x29e   : > { %v1548_v63 = vadd.f32 %v1547_v61, %v1378_v60 }
 0x29f   : > { %v1884_v62 = vadd.f32 %v1883_v58, %v1715_v59 }
 0x2a1   : > { %1956 = vst [vmem:[%s3290_s19 + $0x1d0] sm:$0xff] %v1884_v62 }
 0x2a4   : > { %v1716_v0 = vpop.f32.mrf.mxu2  ;;  %v1381_v3 = vpop.f32.mrf.mxu0 }
 0x2a5   : > { %v1885_v1 = vpop.f32.mrf.mxu3  ;;  %v1717_v2 = vadd.f32 %v1716_v0, %v1548_v63  ;;  %v1550_v4 = vpop.f32.mrf.mxu1 }
 0x2a6   : > { %v1551_v6 = vadd.f32 %v1550_v4, %v1381_v3 }
 0x2a7   : > { %v1886_v5 = vadd.f32 %v1885_v1, %v1717_v2 }
 0x2a9   : > { %1957 = vst [vmem:[%s3290_s19 + $0x1d8] sm:$0xff] %v1886_v5 }
 0x2ac   : > { %v1719_v7 = vpop.f32.mrf.mxu2  ;;  %v1383_v10 = vpop.f32.mrf.mxu0 }
 0x2ad   : > { %v1888_v8 = vpop.f32.mrf.mxu3  ;;  %v1720_v9 = vadd.f32 %v1719_v7, %v1551_v6  ;;  %v1552_v11 = vpop.f32.mrf.mxu1 }
 0x2ae   : > { %v1553_v13 = vadd.f32 %v1552_v11, %v1383_v10 }
 0x2af   : > { %v1889_v12 = vadd.f32 %v1888_v8, %v1720_v9 }
 0x2b1   : > { %1958 = vst [vmem:[%s3290_s19 + $0x1e0] sm:$0xff] %v1889_v12 }
 0x2b4   : > { %v1721_v14 = vpop.f32.mrf.mxu2  ;;  %v1386_v17 = vpop.f32.mrf.mxu0 }
 0x2b5   : > { %v1890_v15 = vpop.f32.mrf.mxu3  ;;  %v1722_v16 = vadd.f32 %v1721_v14, %v1553_v13  ;;  %v1555_v18 = vpop.f32.mrf.mxu1 }
 0x2b6   : > { %v1556_v20 = vadd.f32 %v1555_v18, %v1386_v17 }
 0x2b7   : > { %v1891_v19 = vadd.f32 %v1890_v15, %v1722_v16 }
 0x2b9   : > { %1959 = vst [vmem:[%s3290_s19 + $0x1e8] sm:$0xff] %v1891_v19 }
 0x2bc   : > { %v1724_v21 = vpop.f32.mrf.mxu2  ;;  %v1388_v25 = vpop.f32.mrf.mxu0 }
 0x2bd   : > { %v1893_v22 = vpop.f32.mrf.mxu3  ;;  %v1725_v23 = vadd.f32 %v1724_v21, %v1556_v20  ;;  %v1557_v26 = vpop.f32.mrf.mxu1 }
 0x2be   : > { %v1558_v27 = vadd.f32 %v1557_v26, %v1388_v25 }
 0x2bf   : > { %v1894_v24 = vadd.f32 %v1893_v22, %v1725_v23 }
 0x2c1   : > { %1960 = vst [vmem:[%s3290_s19 + $0x1f0] sm:$0xff] %v1894_v24 }
 0x2c4   : > { %v1726_v28 = vpop.f32.mrf.mxu2 }
 0x2c5   : > { %v1727_v29 = vadd.f32 %v1726_v28, %v1558_v27  ;;  %v1895_v30 = vpop.f32.mrf.mxu3 }
 0x2c7   : > { %v1896_v31 = vadd.f32 %v1895_v30, %v1727_v29 }
 0x2c9   : > { %1961 = vst [vmem:[%s3290_s19 + $0x1f8] sm:$0xff] %v1896_v31 }
 0x2ca   : > { %3061 = shalt.err (!%p3058_p0)
}
 0x2cb   : > { %s3127_s30 = smov 128   ;;  %s3128_s5 = smov 8  }
 0x2cc   : > { %2901 = dma.vmem_to_hbm [thread:$0]  (%p3223_p5), %s1977_s21, 8192, %s1979_s22, %s1963_s12, %s3127_s30, %s3127_s30, %s3128_s5  }
 0x2cd PF: > { %s1993_s6 = sand.u32 1, %s3100_s9   ;;  %p2912_p3 = pnand %p2080_p11, %p3193_p6 }
 0x2ce   : > { %s1994_s17 = scalar_lea.sflag [#allocation4], %s1993_s6 }
 0x2cf   : > { %p2913_p7 = pneg %p2912_p3 }
 0x2d1   : > { %3095 = dma.done.wait (%p2913_p7), %s1994_s17, 8192  }
 0x2d2   : > { %3097 = vsyncadd (%p2913_p7), %s1994_s17, 4294959104  ;;  %s19_s14 = sadd.s32 1, %s3120_s14   ;;  %s3405_s9 = smov %s3104_s10 }
 0x2d3   : > { %p16_p9 = scmp.ge.s32.totalorder %s19_s14, 4   ;;  %s3406_s10 = smov %s3108_s11 }
 0x2d4   : > { %s3407_s11 = smov %s3232_s8  ;;  %s3408_s12 = smov %s3116_s13 }
 0x2d5   : > { %s3409_s13 = smov %s3411_s29  ;;  %18 = sbr.rel (!%p16_p9) target bundleno = 7 (0x7), region = 78 }
 0x2da   :  { %2000 = vsyncpa [#allocation3], 1 }
 0x2db   :  { %2002 = vsyncpa [#allocation3 + $0x1], 1 }
 0x2dc   :  { %2003 = vsyncpa [#allocation6], 1 }
 0x2dd   :  { %2005 = vsyncpa [#allocation6 + $0x1], 1 }
 0x2de   :  { %2006 = vsyncpa [#allocation4], 1 }
 0x2df   :  { %2008 = vsyncpa [#allocation4 + $0x1], 1 }

</bundles_post_ra>
